<compile_context>
chip_gen: v7x
topology: tpu7x:2x2x1
jax: 0.10.0
libtpu: 0.0.40
codegen_flags: <defaults>
</compile_context>

<pallas_src>
import functools

import jax
import jax.numpy as jnp
from jax.experimental import pallas as pl
from jax.experimental.pallas import tpu as pltpu

LANES = 128
MIB = 1024 * 1024


def _round_up(x, m):
    return (x + m - 1) // m * m


def _pad2(a, rows, cols, dtype):
    out = jnp.zeros((rows, cols), dtype=dtype)
    return out.at[: a.shape[0], : a.shape[1]].set(a.astype(dtype))


def _pick_tiles(n_pad, max_tile):
    """Row/K tiles: 128-multiples dividing n_pad, as large as possible (<= max_tile);
    the row tile prefers >= 2 tiles so the 'parallel' axis feeds both v7x TensorCores."""
    blocks = n_pad // LANES
    divs = [d for d in range(1, blocks + 1) if blocks % d == 0]
    cands = [d for d in divs if d * LANES <= max_tile]
    k_tile = max(cands) * LANES
    two_tile = [d for d in cands if blocks // d >= 2]
    row_tile = (max(two_tile) if two_tile else max(cands)) * LANES
    return row_tile, k_tile


# ---------------------------------------------------------------------------
# Prologue: per-node linear transform, G1 = bf16(X @ W1_aug + b1_aug).
# ---------------------------------------------------------------------------
def _linear_kernel(x_ref, w_ref, b_ref, g_ref):
    g = jnp.dot(x_ref[...], w_ref[...], preferred_element_type=jnp.float32) + b_ref[...]
    g_ref[...] = g.astype(g_ref.dtype)


def _node_linear(x_p, w_p, b_p, row_tile, out_dtype, vmem_limit):
    n_pad, dp = x_p.shape
    hp = w_p.shape[1]
    return pl.pallas_call(
        _linear_kernel,
        out_shape=jax.ShapeDtypeStruct((n_pad, hp), out_dtype),
        grid_spec=pltpu.PrefetchScalarGridSpec(
            num_scalar_prefetch=0,
            grid=(n_pad // row_tile,),
            in_specs=[pl.BlockSpec((row_tile, dp), lambda i: (i, 0)),
                      pl.BlockSpec((dp, hp), lambda i: (0, 0)),
                      pl.BlockSpec((1, hp), lambda i: (0, 0))],
            out_specs=pl.BlockSpec((row_tile, hp), lambda i: (i, 0)),
        ),
        compiler_params=pltpu.CompilerParams(
            dimension_semantics=("parallel",),
            vmem_limit_bytes=vmem_limit,
        ),
        cost_estimate=pl.CostEstimate(
            flops=2 * n_pad * dp * hp,
            transcendentals=0,
            bytes_accessed=x_p.size * 4 + w_p.size * 4 + n_pad * hp * 2),
    )(x_p, w_p, b_p)


# ---------------------------------------------------------------------------
# Pass 1: h1 = relu((A @ G1) / deg); emit G2 = bf16(h1 @ W2 + b2) and 1/deg.
# ---------------------------------------------------------------------------
def _conv1_kernel(a_ref, g1_ref, w2_ref, b2_ref, g2_ref, invdeg_ref, acc_ref,
                  *, deg_lane, k_tile, g_resident):
    k = pl.program_id(1)

    @pl.when(k == 0)
    def _init():
        acc_ref[...] = jnp.zeros_like(acc_ref)

    if g_resident:
        g1 = g1_ref[pl.ds(pl.multiple_of(k * k_tile, k_tile), k_tile), :]
    else:
        g1 = g1_ref[...]
    acc_ref[...] += jnp.dot(a_ref[...], g1, preferred_element_type=jnp.float32)

    @pl.when(k == pl.num_programs(1) - 1)
    def _finalize():
        acc = acc_ref[...]
        # Degree rode along in the same MXU matmul via the ones-column of G1.
        deg = jnp.maximum(acc[:, deg_lane:deg_lane + 1], 1.0)
        inv = 1.0 / deg                              # exact; once per row tile
        h1 = jnp.maximum(acc * inv, 0.0)             # conv1 normalize + relu
        # conv2's per-node linear, fused here (once per row tile, not per K step).
        g2 = jnp.dot(h1, w2_ref[...], preferred_element_type=jnp.float32) + b2_ref[...]
        g2_ref[...] = g2.astype(g2_ref.dtype)
        invdeg_ref[...] = jnp.broadcast_to(inv, invdeg_ref.shape)


# ---------------------------------------------------------------------------
# Pass 2: out = sigmoid(((A @ G2) * invdeg) @ Wfc + bfc).
# ---------------------------------------------------------------------------
def _conv2_fc_kernel(a_ref, g2_ref, invdeg_ref, wfc_ref, bfc_ref, o_ref, acc_ref,
                     *, k_tile, g_resident):
    k = pl.program_id(1)

    @pl.when(k == 0)
    def _init():
        acc_ref[...] = jnp.zeros_like(acc_ref)

    if g_resident:
        g2 = g2_ref[pl.ds(pl.multiple_of(k * k_tile, k_tile), k_tile), :]
    else:
        g2 = g2_ref[...]
    acc_ref[...] += jnp.dot(a_ref[...], g2, preferred_element_type=jnp.float32)

    @pl.when(k == pl.num_programs(1) - 1)
    def _finalize():
        h2 = acc_ref[...] * invdeg_ref[...][:, :1]   # reuse pass-1 degree
        y = jnp.dot(h2, wfc_ref[...], preferred_element_type=jnp.float32) + bfc_ref[...]
        o_ref[...] = jax.nn.sigmoid(y).astype(o_ref.dtype)   # lane-dense (tile, 128) store


def gnn_classifier(x, adj, w1, b1, w2, b2, wfc, bfc, *, max_tile=1024):
    n, din = x.shape
    hid = w1.shape[1]
    out_dim = w2.shape[1]

    # ---- geometry ----
    n_pad = _round_up(n, LANES)
    row_tile, k_tile = _pick_tiles(n_pad, max_tile)
    n_row_tiles = n_pad // row_tile
    n_k_tiles = n_pad // k_tile

    dp = _round_up(din, LANES)
    # One padded lane carries the all-ones "degree" column for pass 1 (free unless hid is an
    # exact multiple of 128, in which case it costs one extra lane group).  Pass 2 reuses the
    # pass-1 degree via a small side input, so op is NOT widened.
    deg_lane = hid
    hp = _round_up(hid + 1, LANES)
    op = _round_up(out_dim, LANES)

    # ---- padded, lane-dense operands.  A/G in bf16 (edge counts are exact in bf16). ----
    a_p = _pad2(adj, n_pad, n_pad, jnp.bfloat16)
    x_p = _pad2(x, n_pad, dp, jnp.float32)
    w1_p = _pad2(w1, dp, hp, jnp.float32)                 # column `deg_lane` is zero padding
    b1_p = _pad2(b1.reshape(1, -1), 1, hp, jnp.float32)
    b1_p = b1_p.at[0, deg_lane].set(1.0)                  # ones-column folded into the bias
    w2_p = _pad2(w2, hp, op, jnp.float32)                 # row `deg_lane` is zero -> the ~1 in
    b2_p = _pad2(b2.reshape(1, -1), 1, op, jnp.float32)   # h1's degree lane never leaks
    wfc_p = _pad2(wfc, op, LANES, jnp.float32)
    bfc_p = _pad2(bfc.reshape(1, -1), 1, LANES, jnp.float32)

    # ---- VMEM budget: 64 MiB on chips with 128 MiB physical VMEM (v5e/v6e), else 32 MiB. ----
    vmem_limit = 32 * MIB
    try:
        if pltpu.get_tpu_info().vmem_capacity_bytes > 64 * MIB:
            vmem_limit = 64 * MIB
    except Exception:
        pass

    # Keep the streamed operand fully VMEM-resident (loaded once) when it is small, instead of
    # re-streaming it n_row_tiles times from HBM.
    resident_limit = 4 * MIB
    g1_resident = n_k_tiles > 1 and n_pad * hp * 2 <= resident_limit
    g2_resident = n_k_tiles > 1 and n_pad * op * 2 <= resident_limit

    grid = (n_row_tiles, n_k_tiles)   # (row tiles: parallel, K reduction: last / arbitrary)
    a_spec = pl.BlockSpec((row_tile, k_tile), lambda i, k: (i, k))

    def _full(shape):
        return pl.BlockSpec(shape, lambda i, k: (0, 0))

    g1_spec = _full((n_pad, hp)) if g1_resident else pl.BlockSpec((k_tile, hp), lambda i, k: (k, 0))
    g2_spec = _full((n_pad, op)) if g2_resident else pl.BlockSpec((k_tile, op), lambda i, k: (k, 0))

    compiler_params = pltpu.CompilerParams(
        dimension_semantics=("parallel", "arbitrary"),
        vmem_limit_bytes=vmem_limit,
    )

    # ---- prologue: G1 = bf16(X @ W1_aug + b1_aug), computed once ----
    g1 = _node_linear(x_p, w1_p, b1_p, row_tile, jnp.bfloat16, vmem_limit)

    # ---- pass 1: aggregate conv1, fuse relu + conv2 linear into the finalize ----
    cost1 = pl.CostEstimate(
        flops=2 * n_pad * n_pad * hp + 2 * n_pad * hp * op,
        transcendentals=0,
        bytes_accessed=(a_p.size * 2
                        + g1.size * 2 * (1 if g1_resident else n_row_tiles)
                        + n_pad * op * 2 + n_pad * LANES * 4),
    )
    g2, invdeg = pl.pallas_call(
        functools.partial(_conv1_kernel, deg_lane=deg_lane, k_tile=k_tile,
                          g_resident=g1_resident),
        out_shape=(jax.ShapeDtypeStruct((n_pad, op), jnp.bfloat16),
                   jax.ShapeDtypeStruct((n_pad, LANES), jnp.float32)),
        grid_spec=pltpu.PrefetchScalarGridSpec(
            num_scalar_prefetch=0,
            grid=grid,
            in_specs=[a_spec, g1_spec, _full((hp, op)), _full((1, op))],
            out_specs=(pl.BlockSpec((row_tile, op), lambda i, k: (i, 0)),
                       pl.BlockSpec((row_tile, LANES), lambda i, k: (i, 0))),
            scratch_shapes=[pltpu.VMEM((row_tile, hp), jnp.float32)],
        ),
        compiler_params=compiler_params,
        cost_estimate=cost1,
    )(a_p, g1, w2_p, b2_p)

    # ---- pass 2: aggregate conv2, normalize with reused 1/deg, fc + sigmoid ----
    cost2 = pl.CostEstimate(
        flops=2 * n_pad * n_pad * op + 2 * n_pad * op * LANES,
        transcendentals=n_pad * LANES,
        bytes_accessed=(a_p.size * 2
                        + g2.size * 2 * (1 if g2_resident else n_row_tiles)
                        + n_pad * LANES * 8),
    )
    logits = pl.pallas_call(
        functools.partial(_conv2_fc_kernel, k_tile=k_tile, g_resident=g2_resident),
        out_shape=jax.ShapeDtypeStruct((n_pad, LANES), jnp.float32),
        grid_spec=pltpu.PrefetchScalarGridSpec(
            num_scalar_prefetch=0,
            grid=grid,
            in_specs=[a_spec, g2_spec,
                      pl.BlockSpec((row_tile, LANES), lambda i, k: (i, 0)),
                      _full((op, LANES)), _full((1, LANES))],
            out_specs=pl.BlockSpec((row_tile, LANES), lambda i, k: (i, 0)),
            scratch_shapes=[pltpu.VMEM((row_tile, op), jnp.float32)],
        ),
        compiler_params=compiler_params,
        cost_estimate=cost2,
    )(a_p, g2, invdeg, wfc_p, bfc_p)

    return logits[:n, :1]


def build_adjacency(edge_index, num_nodes):
    # A[row, col] += 1 per edge — same counting the PyTorch loops perform.
    row, col = edge_index
    A = jnp.zeros((num_nodes, num_nodes), dtype=jnp.float32)
    A = A.at[row, col].add(1.0)
    return A


if __name__ == "__main__":
    key = jax.random.PRNGKey(0)

    # Small deterministic problem: 8 nodes, input_dim=4, hidden_dim=16, output_dim=8.
    num_nodes = 8
    input_dim = 4
    hidden_dim = 16
    output_dim = 8

    edge_list = [(0, 1), (1, 0), (1, 2), (2, 1), (2, 3), (3, 2),
                 (3, 4), (4, 3), (4, 5), (5, 4), (5, 6), (6, 5),
                 (6, 7), (7, 6), (0, 7), (7, 0)]
    edge_index = jnp.array(edge_list, dtype=jnp.int32).T  # (2, E)

    keys = jax.random.split(key, 8)
    node_features = jax.random.normal(keys[0], (num_nodes, input_dim), dtype=jnp.float32)

    # nn.Linear-shaped params, stored pre-transposed as (in, out); deterministic init.
    def linear_init(kw, kb, fan_in, fan_out):
        bound = 1.0 / jnp.sqrt(jnp.float32(fan_in))
        w = jax.random.uniform(kw, (fan_in, fan_out), jnp.float32, -bound, bound)
        b = jax.random.uniform(kb, (1, fan_out), jnp.float32, -bound, bound)
        return w, b

    w1, b1 = linear_init(keys[1], keys[2], input_dim, hidden_dim)
    w2, b2 = linear_init(keys[3], keys[4], hidden_dim, output_dim)
    wfc, bfc = linear_init(keys[5], keys[6], output_dim, 1)

    adj = build_adjacency(edge_index, num_nodes)

    out = jax.jit(gnn_classifier)(node_features, adj, w1, b1, w2, b2, wfc, bfc)
    out = jax.block_until_ready(out)
    assert out.shape == (num_nodes, 1)

    # Pure-JAX references of the same semantics.
    deg = jnp.maximum(adj.sum(axis=1, keepdims=True), 1.0)

    # (a) exact f32 semantics of the PyTorch module
    h = jnp.maximum((adj @ (node_features @ w1 + b1)) / deg, 0.0)
    h = (adj @ (h @ w2 + b2)) / deg
    ref_f32 = jax.nn.sigmoid(h @ wfc + bfc)

    # (b) reference applying the same bf16 rounding the kernel uses for the streamed operands
    a16 = adj.astype(jnp.bfloat16).astype(jnp.float32)
    g1_r = (node_features @ w1 + b1).astype(jnp.bfloat16).astype(jnp.float32)
    hb = jnp.maximum((a16 @ g1_r) / deg, 0.0)
    g2_r = (hb @ w2 + b2).astype(jnp.bfloat16).astype(jnp.float32)
    hb = (a16 @ g2_r) / deg
    ref_bf = jax.nn.sigmoid(hb @ wfc + bfc)

    assert jnp.allclose(out, ref_bf, atol=1e-2), "mismatch vs bf16-matched reference"
    assert jnp.allclose(out, ref_f32, atol=3e-2), "mismatch vs f32 reference"

    print("KERNEL_OK")
</pallas_src>

<mosaic_0001>
module attributes {stable_mosaic.version = 11 : i64} {
  func.func @_linear_kernel(%arg0: i32, %arg1: memref<128x128xf32, #tpu.memory_space<vmem>>, %arg2: memref<128x128xf32, #tpu.memory_space<vmem>>, %arg3: memref<1x128xf32, #tpu.memory_space<vmem>>, %arg4: memref<128x128xbf16, #tpu.memory_space<vmem>>) attributes {dimension_semantics = [#tpu.dimension_semantics<parallel>], iteration_bounds = array<i64: 1>, scalar_prefetch = 0 : i64, scratch_operands = 0 : i64, tpu.core_type = #tpu.core_type<tc>, window_params = [{transform_indices = @transform_0, window_bounds = array<i64: 128, 128>}, {pipeline_mode = #tpu.pipeline_mode<synchronous>, transform_indices = @transform_1, window_bounds = array<i64: 128, 128>}, {pipeline_mode = #tpu.pipeline_mode<synchronous>, transform_indices = @transform_2, window_bounds = array<i64: 1, 128>}, {transform_indices = @transform_3, window_bounds = array<i64: 128, 128>}]} {
    %c0 = arith.constant 0 : index
    %c0_0 = arith.constant 0 : index
    %0 = vector.load %arg1[%c0, %c0_0] : memref<128x128xf32, #tpu.memory_space<vmem>>, vector<128x128xf32>
    %c0_1 = arith.constant 0 : index
    %c0_2 = arith.constant 0 : index
    %1 = vector.load %arg2[%c0_1, %c0_2] : memref<128x128xf32, #tpu.memory_space<vmem>>, vector<128x128xf32>
    %cst = arith.constant dense<0.000000e+00> : vector<128x128xf32>
    %2 = tpu.matmul %0, %1, %cst {dimension_numbers = #tpu.dot_dimension_numbers<[1], [0], [0], [1], [0, 0, 1, 1], [], []>} : vector<128x128xf32>, vector<128x128xf32>, vector<128x128xf32> -> vector<128x128xf32>
    %c0_3 = arith.constant 0 : index
    %c0_4 = arith.constant 0 : index
    %3 = vector.load %arg3[%c0_3, %c0_4] : memref<1x128xf32, #tpu.memory_space<vmem>>, vector<1x128xf32>
    %4 = vector.broadcast %3 : vector<1x128xf32> to vector<128x128xf32>
    %5 = arith.addf %2, %4 : vector<128x128xf32>
    %6 = arith.truncf %5 : vector<128x128xf32> to vector<128x128xbf16>
    %c0_5 = arith.constant 0 : index
    %c0_6 = arith.constant 0 : index
    %7 = vector.load %arg4[%c0_5, %c0_6] : memref<128x128xbf16, #tpu.memory_space<vmem>>, vector<128x128xbf16>
    tpu.vector_store %arg4[%c0_5, %c0_6], %6 {strides = array<i32>} : memref<128x128xbf16, #tpu.memory_space<vmem>>, vector<128x128xbf16>,
    return
  }
  func.func @transform_0(%arg0: i32) -> (i32, i32) {
    %c0_i32 = arith.constant 0 : i32
    %c0_i32_0 = arith.constant 0 : i32
    return %arg0, %c0_i32 : i32, i32
  }
  func.func @transform_1(%arg0: i32) -> (i32, i32) {
    %c0_i32 = arith.constant 0 : i32
    %c0_i32_0 = arith.constant 0 : i32
    %c0_i32_1 = arith.constant 0 : i32
    return %c0_i32, %c0_i32_0 : i32, i32
  }
  func.func @transform_2(%arg0: i32) -> (i32, i32) {
    %c0_i32 = arith.constant 0 : i32
    %c0_i32_0 = arith.constant 0 : i32
    %c0_i32_1 = arith.constant 0 : i32
    return %c0_i32, %c0_i32_0 : i32, i32
  }
  func.func @transform_3(%arg0: i32) -> (i32, i32) {
    %c0_i32 = arith.constant 0 : i32
    %c0_i32_0 = arith.constant 0 : i32
    return %arg0, %c0_i32 : i32, i32
  }
}

module attributes {stable_mosaic.version = 11 : i64} {
  func.func @_conv1_kernel(%arg0: i32, %arg1: i32, %arg2: memref<128x128xbf16, #tpu.memory_space<vmem>>, %arg3: memref<128x128xbf16, #tpu.memory_space<vmem>>, %arg4: memref<128x128xf32, #tpu.memory_space<vmem>>, %arg5: memref<1x128xf32, #tpu.memory_space<vmem>>, %arg6: memref<128x128xbf16, #tpu.memory_space<vmem>>, %arg7: memref<128x128xf32, #tpu.memory_space<vmem>>, %arg8: memref<128x128xf32, #tpu.memory_space<vmem>>) attributes {dimension_semantics = [#tpu.dimension_semantics<parallel>, #tpu.dimension_semantics<arbitrary>], iteration_bounds = array<i64: 1, 1>, scalar_prefetch = 0 : i64, scratch_operands = 1 : i64, tpu.core_type = #tpu.core_type<tc>, window_params = [{transform_indices = @transform_0, window_bounds = array<i64: 128, 128>}, {transform_indices = @transform_1, window_bounds = array<i64: 128, 128>}, {pipeline_mode = #tpu.pipeline_mode<synchronous>, transform_indices = @transform_2, window_bounds = array<i64: 128, 128>}, {pipeline_mode = #tpu.pipeline_mode<synchronous>, transform_indices = @transform_3, window_bounds = array<i64: 1, 128>}, {transform_indices = @transform_4, window_bounds = array<i64: 128, 128>}, {transform_indices = @transform_5, window_bounds = array<i64: 128, 128>}]} {
    %c0_i32 = arith.constant 0 : i32
    %0 = arith.cmpi eq, %arg1, %c0_i32 : i32
    %1 = arith.extui %0 : i1 to i32
    %c0_i32_0 = arith.constant 0 : i32
    %2 = arith.cmpi ne, %1, %c0_i32_0 : i32
    scf.if %2 {
      %cst_10 = arith.constant 0.000000e+00 : f32
      %12 = vector.broadcast %cst_10 : f32 to vector<128x128xf32>
      %c0_11 = arith.constant 0 : index
      %c0_12 = arith.constant 0 : index
      %13 = vector.load %arg8[%c0_11, %c0_12] : memref<128x128xf32, #tpu.memory_space<vmem>>, vector<128x128xf32>
      tpu.vector_store %arg8[%c0_11, %c0_12], %12 {strides = array<i32>} : memref<128x128xf32, #tpu.memory_space<vmem>>, vector<128x128xf32>,
    } else {
    }
    %c0 = arith.constant 0 : index
    %c0_1 = arith.constant 0 : index
    %3 = vector.load %arg3[%c0, %c0_1] : memref<128x128xbf16, #tpu.memory_space<vmem>>, vector<128x128xbf16>
    %c0_2 = arith.constant 0 : index
    %c0_3 = arith.constant 0 : index
    %4 = vector.load %arg8[%c0_2, %c0_3] : memref<128x128xf32, #tpu.memory_space<vmem>>, vector<128x128xf32>
    %c0_4 = arith.constant 0 : index
    %c0_5 = arith.constant 0 : index
    %5 = vector.load %arg2[%c0_4, %c0_5] : memref<128x128xbf16, #tpu.memory_space<vmem>>, vector<128x128xbf16>
    %cst = arith.constant dense<0.000000e+00> : vector<128x128xf32>
    %6 = tpu.matmul %5, %3, %cst {dimension_numbers = #tpu.dot_dimension_numbers<[1], [0], [0], [1], [0, 0, 1, 1], [], []>} : vector<128x128xbf16>, vector<128x128xbf16>, vector<128x128xf32> -> vector<128x128xf32>
    %7 = arith.addf %4, %6 : vector<128x128xf32>
    %c0_6 = arith.constant 0 : index
    %c0_7 = arith.constant 0 : index
    %8 = vector.load %arg8[%c0_6, %c0_7] : memref<128x128xf32, #tpu.memory_space<vmem>>, vector<128x128xf32>
    tpu.vector_store %arg8[%c0_6, %c0_7], %7 {strides = array<i32>} : memref<128x128xf32, #tpu.memory_space<vmem>>, vector<128x128xf32>,
    %c0_i32_8 = arith.constant 0 : i32
    %9 = arith.cmpi eq, %arg1, %c0_i32_8 : i32
    %10 = arith.extui %9 : i1 to i32
    %c0_i32_9 = arith.constant 0 : i32
    %11 = arith.cmpi ne, %10, %c0_i32_9 : i32
    scf.if %11 {
      %c0_10 = arith.constant 0 : index
      %c0_11 = arith.constant 0 : index
      %12 = vector.load %arg8[%c0_10, %c0_11] : memref<128x128xf32, #tpu.memory_space<vmem>>, vector<128x128xf32>
      %13 = vector.extract_strided_slice %12 {offsets = [0, 16], sizes = [128, 1], strides = [1, 1]} : vector<128x128xf32> to vector<128x1xf32>
      %cst_12 = arith.constant 1.000000e+00 : f32
      %14 = vector.broadcast %cst_12 : f32 to vector<128x1xf32>
      %15 = arith.maximumf %13, %14 : vector<128x1xf32>
      %cst_13 = arith.constant 1.000000e+00 : f32
      %16 = vector.broadcast %cst_13 : f32 to vector<128x1xf32>
      %17 = arith.divf %16, %15 : vector<128x1xf32>
      %18 = vector.broadcast %17 : vector<128x1xf32> to vector<128x128xf32>
      %19 = arith.mulf %12, %18 : vector<128x128xf32>
      %cst_14 = arith.constant 0.000000e+00 : f32
      %20 = vector.broadcast %cst_14 : f32 to vector<128x128xf32>
      %21 = arith.maximumf %19, %20 : vector<128x128xf32>
      %c0_15 = arith.constant 0 : index
      %c0_16 = arith.constant 0 : index
      %22 = vector.load %arg4[%c0_15, %c0_16] : memref<128x128xf32, #tpu.memory_space<vmem>>, vector<128x128xf32>
      %cst_17 = arith.constant dense<0.000000e+00> : vector<128x128xf32>
      %23 = tpu.matmul %21, %22, %cst_17 {dimension_numbers = #tpu.dot_dimension_numbers<[1], [0], [0], [1], [0, 0, 1, 1], [], []>} : vector<128x128xf32>, vector<128x128xf32>, vector<128x128xf32> -> vector<128x128xf32>
      %c0_18 = arith.constant 0 : index
      %c0_19 = arith.constant 0 : index
      %24 = vector.load %arg5[%c0_18, %c0_19] : memref<1x128xf32, #tpu.memory_space<vmem>>, vector<1x128xf32>
      %25 = vector.broadcast %24 : vector<1x128xf32> to vector<128x128xf32>
      %26 = arith.addf %23, %25 : vector<128x128xf32>
      %27 = arith.truncf %26 : vector<128x128xf32> to vector<128x128xbf16>
      %c0_20 = arith.constant 0 : index
      %c0_21 = arith.constant 0 : index
      %28 = vector.load %arg6[%c0_20, %c0_21] : memref<128x128xbf16, #tpu.memory_space<vmem>>, vector<128x128xbf16>
      tpu.vector_store %arg6[%c0_20, %c0_21], %27 {strides = array<i32>} : memref<128x128xbf16, #tpu.memory_space<vmem>>, vector<128x128xbf16>,
      %29 = vector.shape_cast %17 : vector<128x1xf32> to vector<128x1xf32>
      %30 = vector.broadcast %29 : vector<128x1xf32> to vector<128x128xf32>
      %c0_22 = arith.constant 0 : index
      %c0_23 = arith.constant 0 : index
      %31 = vector.load %arg7[%c0_22, %c0_23] : memref<128x128xf32, #tpu.memory_space<vmem>>, vector<128x128xf32>
      tpu.vector_store %arg7[%c0_22, %c0_23], %30 {strides = array<i32>} : memref<128x128xf32, #tpu.memory_space<vmem>>, vector<128x128xf32>,
    } else {
    }
    return
  }
  func.func @transform_0(%arg0: i32, %arg1: i32) -> (i32, i32) {
    %c0_i32 = arith.constant 0 : i32
    return %arg0, %arg1 : i32, i32
  }
  func.func @transform_1(%arg0: i32, %arg1: i32) -> (i32, i32) {
    %c0_i32 = arith.constant 0 : i32
    %c0_i32_0 = arith.constant 0 : i32
    return %arg1, %c0_i32 : i32, i32
  }
  func.func @transform_2(%arg0: i32, %arg1: i32) -> (i32, i32) {
    %c0_i32 = arith.constant 0 : i32
    %c0_i32_0 = arith.constant 0 : i32
    %c0_i32_1 = arith.constant 0 : i32
    return %c0_i32, %c0_i32_0 : i32, i32
  }
  func.func @transform_3(%arg0: i32, %arg1: i32) -> (i32, i32) {
    %c0_i32 = arith.constant 0 : i32
    %c0_i32_0 = arith.constant 0 : i32
    %c0_i32_1 = arith.constant 0 : i32
    return %c0_i32, %c0_i32_0 : i32, i32
  }
  func.func @transform_4(%arg0: i32, %arg1: i32) -> (i32, i32) {
    %c0_i32 = arith.constant 0 : i32
    %c0_i32_0 = arith.constant 0 : i32
    return %arg0, %c0_i32 : i32, i32
  }
  func.func @transform_5(%arg0: i32, %arg1: i32) -> (i32, i32) {
    %c0_i32 = arith.constant 0 : i32
    %c0_i32_0 = arith.constant 0 : i32
    return %arg0, %c0_i32 : i32, i32
  }
}

module attributes {stable_mosaic.version = 11 : i64} {
  func.func @_conv2_fc_kernel(%arg0: i32, %arg1: i32, %arg2: memref<128x128xbf16, #tpu.memory_space<vmem>>, %arg3: memref<128x128xbf16, #tpu.memory_space<vmem>>, %arg4: memref<128x128xf32, #tpu.memory_space<vmem>>, %arg5: memref<128x128xf32, #tpu.memory_space<vmem>>, %arg6: memref<1x128xf32, #tpu.memory_space<vmem>>, %arg7: memref<128x128xf32, #tpu.memory_space<vmem>>, %arg8: memref<128x128xf32, #tpu.memory_space<vmem>>) attributes {dimension_semantics = [#tpu.dimension_semantics<parallel>, #tpu.dimension_semantics<arbitrary>], iteration_bounds = array<i64: 1, 1>, scalar_prefetch = 0 : i64, scratch_operands = 1 : i64, tpu.core_type = #tpu.core_type<tc>, window_params = [{transform_indices = @transform_0, window_bounds = array<i64: 128, 128>}, {transform_indices = @transform_1, window_bounds = array<i64: 128, 128>}, {transform_indices = @transform_2, window_bounds = array<i64: 128, 128>}, {pipeline_mode = #tpu.pipeline_mode<synchronous>, transform_indices = @transform_3, window_bounds = array<i64: 128, 128>}, {pipeline_mode = #tpu.pipeline_mode<synchronous>, transform_indices = @transform_4, window_bounds = array<i64: 1, 128>}, {transform_indices = @transform_5, window_bounds = array<i64: 128, 128>}]} {
    %c0_i32 = arith.constant 0 : i32
    %0 = arith.cmpi eq, %arg1, %c0_i32 : i32
    %1 = arith.extui %0 : i1 to i32
    %c0_i32_0 = arith.constant 0 : i32
    %2 = arith.cmpi ne, %1, %c0_i32_0 : i32
    scf.if %2 {
      %cst_10 = arith.constant 0.000000e+00 : f32
      %12 = vector.broadcast %cst_10 : f32 to vector<128x128xf32>
      %c0_11 = arith.constant 0 : index
      %c0_12 = arith.constant 0 : index
      %13 = vector.load %arg8[%c0_11, %c0_12] : memref<128x128xf32, #tpu.memory_space<vmem>>, vector<128x128xf32>
      tpu.vector_store %arg8[%c0_11, %c0_12], %12 {strides = array<i32>} : memref<128x128xf32, #tpu.memory_space<vmem>>, vector<128x128xf32>,
    } else {
    }
    %c0 = arith.constant 0 : index
    %c0_1 = arith.constant 0 : index
    %3 = vector.load %arg3[%c0, %c0_1] : memref<128x128xbf16, #tpu.memory_space<vmem>>, vector<128x128xbf16>
    %c0_2 = arith.constant 0 : index
    %c0_3 = arith.constant 0 : index
    %4 = vector.load %arg8[%c0_2, %c0_3] : memref<128x128xf32, #tpu.memory_space<vmem>>, vector<128x128xf32>
    %c0_4 = arith.constant 0 : index
    %c0_5 = arith.constant 0 : index
    %5 = vector.load %arg2[%c0_4, %c0_5] : memref<128x128xbf16, #tpu.memory_space<vmem>>, vector<128x128xbf16>
    %cst = arith.constant dense<0.000000e+00> : vector<128x128xf32>
    %6 = tpu.matmul %5, %3, %cst {dimension_numbers = #tpu.dot_dimension_numbers<[1], [0], [0], [1], [0, 0, 1, 1], [], []>} : vector<128x128xbf16>, vector<128x128xbf16>, vector<128x128xf32> -> vector<128x128xf32>
    %7 = arith.addf %4, %6 : vector<128x128xf32>
    %c0_6 = arith.constant 0 : index
    %c0_7 = arith.constant 0 : index
    %8 = vector.load %arg8[%c0_6, %c0_7] : memref<128x128xf32, #tpu.memory_space<vmem>>, vector<128x128xf32>
    tpu.vector_store %arg8[%c0_6, %c0_7], %7 {strides = array<i32>} : memref<128x128xf32, #tpu.memory_space<vmem>>, vector<128x128xf32>,
    %c0_i32_8 = arith.constant 0 : i32
    %9 = arith.cmpi eq, %arg1, %c0_i32_8 : i32
    %10 = arith.extui %9 : i1 to i32
    %c0_i32_9 = arith.constant 0 : i32
    %11 = arith.cmpi ne, %10, %c0_i32_9 : i32
    scf.if %11 {
      %c0_10 = arith.constant 0 : index
      %c0_11 = arith.constant 0 : index
      %12 = vector.load %arg8[%c0_10, %c0_11] : memref<128x128xf32, #tpu.memory_space<vmem>>, vector<128x128xf32>
      %c0_12 = arith.constant 0 : index
      %c0_13 = arith.constant 0 : index
      %13 = vector.load %arg4[%c0_12, %c0_13] : memref<128x128xf32, #tpu.memory_space<vmem>>, vector<128x128xf32>
      %14 = vector.extract_strided_slice %13 {offsets = [0, 0], sizes = [128, 1], strides = [1, 1]} : vector<128x128xf32> to vector<128x1xf32>
      %15 = vector.broadcast %14 : vector<128x1xf32> to vector<128x128xf32>
      %16 = arith.mulf %12, %15 : vector<128x128xf32>
      %c0_14 = arith.constant 0 : index
      %c0_15 = arith.constant 0 : index
      %17 = vector.load %arg5[%c0_14, %c0_15] : memref<128x128xf32, #tpu.memory_space<vmem>>, vector<128x128xf32>
      %cst_16 = arith.constant dense<0.000000e+00> : vector<128x128xf32>
      %18 = tpu.matmul %16, %17, %cst_16 {dimension_numbers = #tpu.dot_dimension_numbers<[1], [0], [0], [1], [0, 0, 1, 1], [], []>} : vector<128x128xf32>, vector<128x128xf32>, vector<128x128xf32> -> vector<128x128xf32>
      %c0_17 = arith.constant 0 : index
      %c0_18 = arith.constant 0 : index
      %19 = vector.load %arg6[%c0_17, %c0_18] : memref<1x128xf32, #tpu.memory_space<vmem>>, vector<1x128xf32>
      %20 = vector.broadcast %19 : vector<1x128xf32> to vector<128x128xf32>
      %21 = arith.addf %18, %20 : vector<128x128xf32>
      %22 = arith.negf %21 : vector<128x128xf32>
      %23 = math.exp %22 : vector<128x128xf32>
      %cst_19 = arith.constant 1.000000e+00 : f32
      %24 = vector.broadcast %cst_19 : f32 to vector<128x128xf32>
      %25 = arith.addf %24, %23 : vector<128x128xf32>
      %26 = arith.divf %24, %25 : vector<128x128xf32>
      %c0_20 = arith.constant 0 : index
      %c0_21 = arith.constant 0 : index
      %27 = vector.load %arg7[%c0_20, %c0_21] : memref<128x128xf32, #tpu.memory_space<vmem>>, vector<128x128xf32>
      tpu.vector_store %arg7[%c0_20, %c0_21], %26 {strides = array<i32>} : memref<128x128xf32, #tpu.memory_space<vmem>>, vector<128x128xf32>,
    } else {
    }
    return
  }
  func.func @transform_0(%arg0: i32, %arg1: i32) -> (i32, i32) {
    %c0_i32 = arith.constant 0 : i32
    return %arg0, %arg1 : i32, i32
  }
  func.func @transform_1(%arg0: i32, %arg1: i32) -> (i32, i32) {
    %c0_i32 = arith.constant 0 : i32
    %c0_i32_0 = arith.constant 0 : i32
    return %arg1, %c0_i32 : i32, i32
  }
  func.func @transform_2(%arg0: i32, %arg1: i32) -> (i32, i32) {
    %c0_i32 = arith.constant 0 : i32
    %c0_i32_0 = arith.constant 0 : i32
    return %arg0, %c0_i32 : i32, i32
  }
  func.func @transform_3(%arg0: i32, %arg1: i32) -> (i32, i32) {
    %c0_i32 = arith.constant 0 : i32
    %c0_i32_0 = arith.constant 0 : i32
    %c0_i32_1 = arith.constant 0 : i32
    return %c0_i32, %c0_i32_0 : i32, i32
  }
  func.func @transform_4(%arg0: i32, %arg1: i32) -> (i32, i32) {
    %c0_i32 = arith.constant 0 : i32
    %c0_i32_0 = arith.constant 0 : i32
    %c0_i32_1 = arith.constant 0 : i32
    return %c0_i32, %c0_i32_0 : i32, i32
  }
  func.func @transform_5(%arg0: i32, %arg1: i32) -> (i32, i32) {
    %c0_i32 = arith.constant 0 : i32
    %c0_i32_0 = arith.constant 0 : i32
    return %arg0, %c0_i32 : i32, i32
  }
}

</mosaic_0001>

<bundles_post_ra>
// kernel: gnn_classifier.3
= control target key start
LH: loop header
LB: loop body
LE: loop exit
PB: predicated region body
PF: predicated region fallthrough
CT: control target
= control target key end

     0   :  { %s641_s1 = inlined_call_operand.vmem [shape: f32[128,128], index: 1, kind: input, shape index: {}]   ;;  %s642_s0 = inlined_call_operand.vmem [shape: f32[128,128], index: 0, kind: input, shape index: {}]   ;;  %s643_s2 = inlined_call_operand.vmem [shape: f32[1,128], index: 2, kind: input, shape index: {}]   ;;  %s644_s3 = inlined_call_operand.vmem [shape: bf16[128,128], index: 3, kind: output, shape index: {}]  }
   0x1   :  { %v30_v0 = vld [vmem:[%s641_s1] sm:$0xff]  ;;  %v31_v1 = vld [vmem:[%s641_s1 + $0x8] sm:$0xff]  ;;  %v32_v2 = vld [vmem:[%s641_s1 + $0x10] sm:$0xff] }
   0x2   :  { %v450_v3 = vpack.c.bf16 %v31_v1, %v30_v0  ;;  %v33_v4 = vld [vmem:[%s641_s1 + $0x18] sm:$0xff]  ;;  %v34_v6 = vld [vmem:[%s641_s1 + $0x20] sm:$0xff]  ;;  %v35_v7 = vld [vmem:[%s641_s1 + $0x28] sm:$0xff] }
   0x3   :  { %v454_v5 = vpack.c.bf16 %v33_v4, %v32_v2  ;;  %v458_v8 = vpack.c.bf16 %v35_v7, %v34_v6  ;;  %v14_v9 = vld [vmem:[%s642_s0] sm:$0xff]  ;;  %v36_v11 = vld [vmem:[%s641_s1 + $0x30] sm:$0xff]  ;;  %v37_v12 = vld [vmem:[%s641_s1 + $0x38] sm:$0xff] }
   0x4   :  { %451 = vmatprep.subr.bf16.mxu0 %v450_v3  ;;  %482 = vmatprep.subr.bf16.mxu1 %v450_v3  ;;  %v22_v10 = vld [vmem:[%s642_s0 + $0x40] sm:$0xff]  ;;  %v462_v13 = vpack.c.bf16 %v37_v12, %v36_v11  ;;  %v39_v15 = vld [vmem:[%s641_s1 + $0x48] sm:$0xff]  ;;  %v40_v17 = vld [vmem:[%s641_s1 + $0x50] sm:$0xff] }
   0x5   :  { %453 = vmatpush3.bf16.msra.mxu0 %v450_v3  ;;  %490 = vmatpush3.bf16.msra.mxu1 %v450_v3  ;;  %v38_v14 = vld [vmem:[%s641_s1 + $0x40] sm:$0xff]  ;;  %v41_v18 = vld [vmem:[%s641_s1 + $0x58] sm:$0xff]  ;;  %v43_v21 = vld [vmem:[%s641_s1 + $0x68] sm:$0xff] }
   0x6   :  { %455 = vmatprep.subr.bf16.mxu0 %v454_v5  ;;  %483 = vmatprep.subr.bf16.mxu1 %v454_v5  ;;  %v466_v16 = vpack.c.bf16 %v39_v15, %v38_v14  ;;  %v470_v19 = vpack.c.bf16 %v41_v18, %v40_v17  ;;  %v42_v20 = vld [vmem:[%s641_s1 + $0x60] sm:$0xff]  ;;  %v44_v23 = vld [vmem:[%s641_s1 + $0x70] sm:$0xff]  ;;  %v45_v24 = vld [vmem:[%s641_s1 + $0x78] sm:$0xff] }
   0x7   :  { %426 = vmatprep.mubr.f32.mxu0 %v14_v9  ;;  %438 = vmatprep.mubr.f32.mxu1 %v22_v10  ;;  %v474_v22 = vpack.c.bf16 %v43_v21, %v42_v20  ;;  %v478_v25 = vpack.c.bf16 %v45_v24, %v44_v23  ;;  %v15_v26 = vld [vmem:[%s642_s0 + $0x8] sm:$0xff]  ;;  %v16_v28 = vld [vmem:[%s642_s0 + $0x10] sm:$0xff]  ;;  %v17_v30 = vld [vmem:[%s642_s0 + $0x18] sm:$0xff] }
   0x8   :  { %v23_v27 = vld [vmem:[%s642_s0 + $0x48] sm:$0xff]  ;;  %v24_v29 = vld [vmem:[%s642_s0 + $0x50] sm:$0xff]  ;;  %v25_v31 = vld [vmem:[%s642_s0 + $0x58] sm:$0xff] }
   0x9   :  { %457 = vmatpush3.bf16.msra.mxu0 %v454_v5  ;;  %491 = vmatpush3.bf16.msra.mxu1 %v454_v5  ;;  %v18_v32 = vld [vmem:[%s642_s0 + $0x20] sm:$0xff]  ;;  %v19_v34 = vld [vmem:[%s642_s0 + $0x28] sm:$0xff]  ;;  %v20_v36 = vld [vmem:[%s642_s0 + $0x30] sm:$0xff] }
   0xa   :  { %459 = vmatprep.subr.bf16.mxu0 %v458_v8  ;;  %484 = vmatprep.subr.bf16.mxu1 %v458_v8  ;;  %v26_v33 = vld [vmem:[%s642_s0 + $0x60] sm:$0xff]  ;;  %v27_v35 = vld [vmem:[%s642_s0 + $0x68] sm:$0xff]  ;;  %v28_v37 = vld [vmem:[%s642_s0 + $0x70] sm:$0xff] }
   0xb   :  { %v21_v38 = vld [vmem:[%s642_s0 + $0x38] sm:$0xff]  ;;  %v282_v40 = vld [vmem:[%s643_s2] ss:$0 sm:$0xff] }
   0xc   :  { %v29_v39 = vld [vmem:[%s642_s0 + $0x78] sm:$0xff] }
   0xd   :  { %461 = vmatpush3.bf16.msra.mxu0 %v458_v8  ;;  %492 = vmatpush3.bf16.msra.mxu1 %v458_v8 }
   0xe   :  { %463 = vmatprep.subr.bf16.mxu0 %v462_v13  ;;  %485 = vmatprep.subr.bf16.mxu1 %v462_v13 }
  0x11   :  { %465 = vmatpush3.bf16.msra.mxu0 %v462_v13  ;;  %493 = vmatpush3.bf16.msra.mxu1 %v462_v13 }
  0x12   :  { %467 = vmatprep.subr.bf16.mxu0 %v466_v16  ;;  %486 = vmatprep.subr.bf16.mxu1 %v466_v16 }
  0x15   :  { %469 = vmatpush3.bf16.msra.mxu0 %v466_v16  ;;  %494 = vmatpush3.bf16.msra.mxu1 %v466_v16 }
  0x16   :  { %471 = vmatprep.subr.bf16.mxu0 %v470_v19  ;;  %487 = vmatprep.subr.bf16.mxu1 %v470_v19 }
  0x19   :  { %473 = vmatpush3.bf16.msra.mxu0 %v470_v19  ;;  %495 = vmatpush3.bf16.msra.mxu1 %v470_v19 }
  0x1a   :  { %475 = vmatprep.subr.bf16.mxu0 %v474_v22  ;;  %488 = vmatprep.subr.bf16.mxu1 %v474_v22 }
  0x1d   :  { %477 = vmatpush3.bf16.msra.mxu0 %v474_v22  ;;  %496 = vmatpush3.bf16.msra.mxu1 %v474_v22 }
  0x1e   :  { %479 = vmatprep.subr.bf16.mxu0 %v478_v25  ;;  %489 = vmatprep.subr.bf16.mxu1 %v478_v25 }
  0x21   :  { %481 = vmatpush3.bf16.msra.mxu0 %v478_v25  ;;  %497 = vmatpush3.bf16.msra.mxu1 %v478_v25 }
  0x24   :  { %427 = vmatmul.mubr.f32.vlgmr.msra.gmra.mrb[0].mxu0 %v15_v26  ;;  %439 = vmatmul.mubr.f32.vlgmr.msra.gmra.mrb[0].mxu1 %v23_v27 }
  0x25   :  { %429 = vmatprep.mubr.f32.mxu0 %v16_v28  ;;  %441 = vmatprep.mubr.f32.mxu1 %v24_v29 }
  0x28   :  { %430 = vmatmul.mubr.f32.gmra.mrb[2].mxu0 %v17_v30  ;;  %442 = vmatmul.mubr.f32.gmra.mrb[2].mxu1 %v25_v31 }
  0x29   :  { %432 = vmatprep.mubr.f32.mxu0 %v18_v32  ;;  %444 = vmatprep.mubr.f32.mxu1 %v26_v33 }
  0x2c   :  { %433 = vmatmul.mubr.f32.gmra.mrb[4].mxu0 %v19_v34  ;;  %445 = vmatmul.mubr.f32.gmra.mrb[4].mxu1 %v27_v35 }
  0x2d   :  { %435 = vmatprep.mubr.f32.mxu0 %v20_v36  ;;  %447 = vmatprep.mubr.f32.mxu1 %v28_v37 }
  0x30   :  { %436 = vmatmul.mubr.f32.gmra.mrb[6].mxu0 %v21_v38  ;;  %448 = vmatmul.mubr.f32.gmra.mrb[6].mxu1 %v29_v39 }
  0xf7   :  { %v428_v41 = vpop.f32.mrb[0].mxu0  ;;  %v440_v42 = vpop.f32.mrb[0].mxu1 }
  0xf8   :  { %v125_v43 = vadd.f32 %v428_v41, %v282_v40  ;;  %v165_v44 = vadd.f32 %v440_v42, %v282_v40  ;;  %v119_v45 = vpop.f32.mrb[1].mxu0  ;;  %v159_v46 = vpop.f32.mrb[1].mxu1 }
  0xf9   :  { %v120_v47 = vadd.f32 %v282_v40, %v119_v45  ;;  %v160_v48 = vadd.f32 %v282_v40, %v159_v46 }
  0xfb   :  { %v318_v49 = vpack.c.bf16 %v125_v43, %v120_v47  ;;  %v338_v50 = vpack.c.bf16 %v165_v44, %v160_v48  ;;  %v431_v51 = vpop.f32.mrb[2].mxu0  ;;  %v443_v52 = vpop.f32.mrb[2].mxu1 }
  0xfc   :  { %v135_v53 = vadd.f32 %v431_v51, %v282_v40  ;;  %v175_v54 = vadd.f32 %v443_v52, %v282_v40  ;;  %v129_v55 = vpop.f32.mrb[3].mxu0  ;;  %v169_v56 = vpop.f32.mrb[3].mxu1 }
  0xfd   :  { %319 = vst [vmem:[%s644_s3] sm:$0xff] %v318_v49   ;;  %358 = vst [vmem:[%s644_s3 + $0x20] sm:$0xff] %v338_v50   ;;  %v130_v57 = vadd.f32 %v282_v40, %v129_v55  ;;  %v170_v58 = vadd.f32 %v282_v40, %v169_v56 }
  0xff   :  { %v323_v59 = vpack.c.bf16 %v135_v53, %v130_v57  ;;  %v343_v60 = vpack.c.bf16 %v175_v54, %v170_v58  ;;  %v434_v61 = vpop.f32.mrb[4].mxu0  ;;  %v446_v62 = vpop.f32.mrb[4].mxu1 }
 0x100   :  { %v145_v63 = vadd.f32 %v434_v61, %v282_v40  ;;  %v185_v0 = vadd.f32 %v446_v62, %v282_v40  ;;  %v139_v1 = vpop.f32.mrb[5].mxu0  ;;  %v179_v2 = vpop.f32.mrb[5].mxu1 }
 0x101   :  { %355 = vst [vmem:[%s644_s3 + $0x8] sm:$0xff] %v323_v59   ;;  %359 = vst [vmem:[%s644_s3 + $0x28] sm:$0xff] %v343_v60   ;;  %v140_v3 = vadd.f32 %v282_v40, %v139_v1  ;;  %v180_v4 = vadd.f32 %v282_v40, %v179_v2 }
 0x103   :  { %v328_v5 = vpack.c.bf16 %v145_v63, %v140_v3  ;;  %v348_v6 = vpack.c.bf16 %v185_v0, %v180_v4  ;;  %v437_v7 = vpop.f32.mrb[6].mxu0  ;;  %v449_v8 = vpop.f32.mrb[6].mxu1 }
 0x104   :  { %v155_v9 = vadd.f32 %v437_v7, %v282_v40  ;;  %v195_v10 = vadd.f32 %v449_v8, %v282_v40  ;;  %v149_v11 = vpop.f32.mrb[7].mxu0  ;;  %v189_v12 = vpop.f32.mrb[7].mxu1 }
 0x105   :  { %356 = vst [vmem:[%s644_s3 + $0x10] sm:$0xff] %v328_v5   ;;  %360 = vst [vmem:[%s644_s3 + $0x30] sm:$0xff] %v348_v6   ;;  %v150_v13 = vadd.f32 %v282_v40, %v149_v11  ;;  %v190_v14 = vadd.f32 %v282_v40, %v189_v12 }
 0x107   :  { %v333_v15 = vpack.c.bf16 %v155_v9, %v150_v13  ;;  %v353_v16 = vpack.c.bf16 %v195_v10, %v190_v14 }
 0x109   :  { %357 = vst [vmem:[%s644_s3 + $0x18] sm:$0xff] %v333_v15   ;;  %361 = vst [vmem:[%s644_s3 + $0x38] sm:$0xff] %v353_v16  }

// kernel: gnn_classifier.4
= control target key start
LH: loop header
LB: loop body
LE: loop exit
PB: predicated region body
PF: predicated region fallthrough
CT: control target
= control target key end

     0   :  { %v1079_v16 = vmov 16   ;;  %s1345_s1 = inlined_call_operand.vmem [shape: bf16[128,128], index: 1, kind: input, shape index: {}]   ;;  %s1346_s0 = inlined_call_operand.vmem [shape: bf16[128,128], index: 0, kind: input, shape index: {}]   ;;  %s1347_s2 = inlined_call_operand.vmem [shape: f32[128,128], index: 2, kind: input, shape index: {}]   ;;  %s1348_s5 = inlined_call_operand.vmem [shape: f32[128,128], index: 5, kind: output, shape index: {1}]   ;;  %s1349_s3 = inlined_call_operand.vmem [shape: f32[1,128], index: 3, kind: input, shape index: {}]   ;;  %s1350_s4 = inlined_call_operand.vmem [shape: bf16[128,128], index: 4, kind: output, shape index: {0}]  }
   0x1   :  { %v1031_v0 = vld [vmem:[%s1345_s1] sm:$0xff]   ;;  %v1032_v1 = vld [vmem:[%s1345_s1 + $0x8] sm:$0xff]   ;;  %v1033_v2 = vld [vmem:[%s1345_s1 + $0x10] sm:$0xff]   ;;  %1030 = vset.pattern.permute.xlu1 %v1079_v16  ;;  %1029 = vset.pattern.permute.xlu0 %v1079_v16 }
   0x2   :  { %908 = vmatprep.subr.bf16.mxu0 %v1031_v0  ;;  %v1034_v3 = vld [vmem:[%s1345_s1 + $0x18] sm:$0xff]   ;;  %v1039_v4 = vld [vmem:[%s1346_s0] sm:$0xff]   ;;  %v1036_v6 = vld [vmem:[%s1345_s1 + $0x28] sm:$0xff]  }
   0x3   :  { %909 = vmatpush3.bf16.msra.mxu0 %v1031_v0  ;;  %924 = vmatprep.mubr.bf16.mxu0 %v1039_v4  ;;  %v1035_v5 = vld [vmem:[%s1345_s1 + $0x20] sm:$0xff]   ;;  %v1037_v7 = vld [vmem:[%s1345_s1 + $0x30] sm:$0xff]   ;;  %v1038_v8 = vld [vmem:[%s1345_s1 + $0x38] sm:$0xff]  }
   0x4   :  { %910 = vmatprep.subr.bf16.mxu0 %v1032_v1  ;;  %v1040_v9 = vld [vmem:[%s1346_s0 + $0x8] sm:$0xff]   ;;  %v1041_v10 = vld [vmem:[%s1346_s0 + $0x10] sm:$0xff]   ;;  %v1042_v11 = vld [vmem:[%s1346_s0 + $0x18] sm:$0xff]  }
   0x5   :  { %v1043_v12 = vld [vmem:[%s1346_s0 + $0x20] sm:$0xff]   ;;  %v1044_v13 = vld [vmem:[%s1346_s0 + $0x28] sm:$0xff]   ;;  %v1045_v14 = vld [vmem:[%s1346_s0 + $0x30] sm:$0xff]  }
   0x6   :  { %v1046_v15 = vld [vmem:[%s1346_s0 + $0x38] sm:$0xff]   ;;  %v492_v17 = vld [vmem:[%s1347_s2] sm:$0xff]  ;;  %v493_v18 = vld [vmem:[%s1347_s2 + $0x8] sm:$0xff] }
   0x7   :  { %911 = vmatpush3.bf16.msra.mxu0 %v1032_v1  ;;  %v494_v19 = vld [vmem:[%s1347_s2 + $0x10] sm:$0xff]  ;;  %v996_v20 = vpack.c.bf16 %v493_v18, %v492_v17  ;;  %v495_v21 = vld [vmem:[%s1347_s2 + $0x18] sm:$0xff]  ;;  %v496_v23 = vld [vmem:[%s1347_s2 + $0x20] sm:$0xff] }
   0x8   :  { %912 = vmatprep.subr.bf16.mxu0 %v1033_v2  ;;  %v1000_v22 = vpack.c.bf16 %v495_v21, %v494_v19  ;;  %v497_v24 = vld [vmem:[%s1347_s2 + $0x28] sm:$0xff]  ;;  %v498_v26 = vld [vmem:[%s1347_s2 + $0x30] sm:$0xff]  ;;  %v499_v27 = vld [vmem:[%s1347_s2 + $0x38] sm:$0xff] }
   0x9   :  { %997 = vmatprep.subr.bf16.mxu1 %v996_v20  ;;  %v1004_v25 = vpack.c.bf16 %v497_v24, %v496_v23  ;;  %v1008_v28 = vpack.c.bf16 %v499_v27, %v498_v26  ;;  %v500_v29 = vld [vmem:[%s1347_s2 + $0x40] sm:$0xff]  ;;  %v501_v30 = vld [vmem:[%s1347_s2 + $0x48] sm:$0xff]  ;;  %v502_v32 = vld [vmem:[%s1347_s2 + $0x50] sm:$0xff] }
   0xa   :  { %999 = vmatpush3.bf16.msra.mxu1 %v996_v20  ;;  %v1012_v31 = vpack.c.bf16 %v501_v30, %v500_v29  ;;  %v503_v33 = vld [vmem:[%s1347_s2 + $0x58] sm:$0xff]  ;;  %v504_v50 = vld [vmem:[%s1347_s2 + $0x60] sm:$0xff]  ;;  %v505_v51 = vld [vmem:[%s1347_s2 + $0x68] sm:$0xff] }
   0xb   :  { %913 = vmatpush3.bf16.msra.mxu0 %v1033_v2  ;;  %1001 = vmatprep.subr.bf16.mxu1 %v1000_v22  ;;  %v1016_v34 = vpack.c.bf16 %v503_v33, %v502_v32  ;;  %v1020_v53 = vpack.c.bf16 %v505_v51, %v504_v50  ;;  %v506_v57 = vld [vmem:[%s1347_s2 + $0x70] sm:$0xff]  ;;  %v507_v58 = vld [vmem:[%s1347_s2 + $0x78] sm:$0xff] }
   0xc   :  { %914 = vmatprep.subr.bf16.mxu0 %v1034_v3  ;;  %v1024_v61 = vpack.c.bf16 %v507_v58, %v506_v57 }
   0xe   :  { %1003 = vmatpush3.bf16.msra.mxu1 %v1000_v22 }
   0xf   :  { %915 = vmatpush3.bf16.msra.mxu0 %v1034_v3  ;;  %1005 = vmatprep.subr.bf16.mxu1 %v1004_v25 }
  0x10   :  { %916 = vmatprep.subr.bf16.mxu0 %v1035_v5 }
  0x12   :  { %1007 = vmatpush3.bf16.msra.mxu1 %v1004_v25 }
  0x13   :  { %917 = vmatpush3.bf16.msra.mxu0 %v1035_v5  ;;  %1009 = vmatprep.subr.bf16.mxu1 %v1008_v28 }
  0x14   :  { %918 = vmatprep.subr.bf16.mxu0 %v1036_v6 }
  0x16   :  { %1011 = vmatpush3.bf16.msra.mxu1 %v1008_v28 }
  0x17   :  { %919 = vmatpush3.bf16.msra.mxu0 %v1036_v6  ;;  %1013 = vmatprep.subr.bf16.mxu1 %v1012_v31 }
  0x18   :  { %920 = vmatprep.subr.bf16.mxu0 %v1037_v7 }
  0x1a   :  { %1015 = vmatpush3.bf16.msra.mxu1 %v1012_v31 }
  0x1b   :  { %921 = vmatpush3.bf16.msra.mxu0 %v1037_v7  ;;  %1017 = vmatprep.subr.bf16.mxu1 %v1016_v34 }
  0x1c   :  { %922 = vmatprep.subr.bf16.mxu0 %v1038_v8 }
  0x1e   :  { %1019 = vmatpush3.bf16.msra.mxu1 %v1016_v34 }
  0x1f   :  { %923 = vmatpush3.bf16.msra.mxu0 %v1038_v8  ;;  %1021 = vmatprep.subr.bf16.mxu1 %v1020_v53 }
  0x22   :  { %925 = vmatmul.mubr.bf16.vlgmr.msra.gmra.mrb[0].mxu0 %v1040_v9  ;;  %1023 = vmatpush3.bf16.msra.mxu1 %v1020_v53 }
  0x23   :  { %928 = vmatprep.mubr.bf16.mxu0 %v1041_v10  ;;  %1025 = vmatprep.subr.bf16.mxu1 %v1024_v61 }
  0x26   :  { %1027 = vmatpush3.bf16.msra.mxu1 %v1024_v61 }
  0x2a   :  { %929 = vmatmul.mubr.bf16.gmra.mrb[4].mxu0 %v1042_v11 }
  0x2b   :  { %932 = vmatprep.mubr.bf16.mxu0 %v1043_v12 }
  0x32   :  { %933 = vmatmul.mubr.bf16.gmra.mrb[8].mxu0 %v1044_v13 }
  0x33   :  { %936 = vmatprep.mubr.bf16.mxu0 %v1045_v14 }
  0x3a   :  { %937 = vmatmul.mubr.bf16.gmra.mrb[12].mxu0 %v1046_v15 }
  0xf5   :  { %v1194_v35 = vpop.f32.mrb[0].mxu0 }
  0xf6   :  { %v334_v36 = vmax.f32 %v1194_v35, 1.0  ;;  %v1197_v37 = vpop.f32.mrb[1].mxu0 }
  0xf7   :  { %v332_v38 = vmax.f32 %v1197_v37, 1.0  ;;  %v1200_v39 = vpop.f32.mrb[2].mxu0 }
  0xf8   :  { %1047 = vrcp.f32 %v334_v36  ;;  %v335_v40 = vmax.f32 %v1200_v39, 1.0  ;;  %v1203_v41 = vpop.f32.mrb[3].mxu0 }
  0xf9   :  { %1049 = vrcp.f32 %v332_v38  ;;  %v333_v42 = vmax.f32 %v1203_v41, 1.0 }
  0xfa   :  { %1051 = vrcp.f32 %v335_v40 }
  0xfb   :  { %1053 = vrcp.f32 %v333_v42 }
  0xfd   :  { %v1206_v43 = vpop.f32.mrb[4].mxu0 }
  0xfe   :  { %v1208_v44 = vpop.f32.mrb[5].mxu0  ;;  %v338_v48 = vmax.f32 %v1206_v43, 1.0 }
  0xff   :  { %v336_v45 = vmax.f32 %v1208_v44, 1.0  ;;  %v1211_v46 = vpop.f32.mrb[6].mxu0 }
 0x100   :  { %v1213_v47 = vpop.f32.mrb[7].mxu0  ;;  %v339_v55 = vmax.f32 %v1211_v46, 1.0 }
 0x101   :  { %1055 = vrcp.f32 %v336_v45  ;;  %v337_v49 = vmax.f32 %v1213_v47, 1.0 }
 0x102   :  { %v1048_v52 = vpop.eup %1047 }
 0x103   :  { %v1050_v54 = vpop.eup %1049  ;;  %1057 = vrcp.f32 %v337_v49  ;;  %392 = vperm.xlu1 %1030, %v1048_v52  }
 0x104   :  { %382 = vperm.xlu0 %1029, %v1050_v54   ;;  %1059 = vrcp.f32 %v338_v48  ;;  %v1052_v59 = vpop.eup %1051 }
 0x105   :  { %v1224_v56 = vpop.f32.mrb[8].mxu0  ;;  %v1054_v62 = vpop.eup %1053  ;;  %1061 = vrcp.f32 %v339_v55 }
 0x106   :  { %v1232_v60 = vpop.f32.mrb[9].mxu0  ;;  %v342_v2 = vmax.f32 %v1224_v56, 1.0 }
 0x107   :  { %v340_v63 = vmax.f32 %v1232_v60, 1.0  ;;  %397 = vperm.xlu1 %1030, %v1052_v59   ;;  %v1235_v0 = vpop.f32.mrb[10].mxu0 }
 0x108   :  { %387 = vperm.xlu0 %1029, %v1054_v62   ;;  %v1237_v1 = vpop.f32.mrb[11].mxu0  ;;  %v343_v5 = vmax.f32 %v1235_v0, 1.0 }
 0x109   :  { %1063 = vrcp.f32 %v340_v63  ;;  %v341_v3 = vmax.f32 %v1237_v1, 1.0 }
 0x10b   :  { %v1056_v4 = vpop.eup %1055  ;;  %1065 = vrcp.f32 %v341_v3 }
 0x10c   :  { %402 = vperm.xlu0 %1029, %v1056_v4   ;;  %1067 = vrcp.f32 %v342_v2 }
 0x10d   :  { %v1058_v6 = vpop.eup %1057  ;;  %v1242_v7 = vpop.f32.mrb[12].mxu0  ;;  %1069 = vrcp.f32 %v343_v5 }
 0x10e   :  { %407 = vperm.xlu1 %1030, %v1058_v6   ;;  %v1244_v8 = vpop.f32.mrb[13].mxu0  ;;  %v1060_v9 = vpop.eup %1059  ;;  %v346_v14 = vmax.f32 %v1242_v7, 1.0 }
 0x10f   :  { %v344_v10 = vmax.f32 %v1244_v8, 1.0  ;;  %v1247_v11 = vpop.f32.mrb[14].mxu0  ;;  %v1062_v13 = vpop.eup %1061 }
 0x110   :  { %412 = vperm.xlu0 %1029, %v1060_v9   ;;  %v1249_v12 = vpop.f32.mrb[15].mxu0  ;;  %v347_v17 = vmax.f32 %v1247_v11, 1.0 }
 0x111   :  { %1071 = vrcp.f32 %v344_v10  ;;  %v345_v15 = vmax.f32 %v1249_v12, 1.0 }
 0x112   :  { %417 = vperm.xlu1 %1030, %v1062_v13  }
 0x113   :  { %v1064_v16 = vpop.eup %1063  ;;  %1073 = vrcp.f32 %v345_v15 }
 0x114   :  { %422 = vperm.xlu0 %1029, %v1064_v16   ;;  %1075 = vrcp.f32 %v346_v14 }
 0x115   :  { %v1066_v18 = vpop.eup %1065  ;;  %1077 = vrcp.f32 %v347_v17 }
 0x116   :  { %427 = vperm.xlu1 %1030, %v1066_v18   ;;  %v1068_v19 = vpop.eup %1067 }
 0x117   :  { %v1070_v20 = vpop.eup %1069 }
 0x118   :  { %432 = vperm.xlu0 %1029, %v1068_v19  }
 0x11a   :  { %437 = vperm.xlu1 %1030, %v1070_v20  }
 0x11b   :  { %v1072_v21 = vpop.eup %1071 }
 0x11c   :  { %442 = vperm.xlu0 %1029, %v1072_v21  }
 0x11d   :  { %v1074_v22 = vpop.eup %1073 }
 0x11e   :  { %447 = vperm.xlu1 %1030, %v1074_v22   ;;  %v1076_v23 = vpop.eup %1075 }
 0x11f   :  { %v1078_v24 = vpop.eup %1077 }
 0x120   :  { %452 = vperm.xlu0 %1029, %v1076_v23  }
 0x122   :  { %457 = vperm.xlu1 %1030, %v1078_v24  }
 0x182   :  { %v393_v25 = vpop.permute.xlu1 %392 }
 0x183   :  { %742 = vst [vmem:[%s1348_s5 + $0x10] sm:$0xff] %v393_v25  ;;  %v383_v26 = vpop.permute.xlu0 %382  ;;  %v462_v30 = vmul.f32 %v1194_v35, %v393_v25 }
 0x184   :  { %740 = vst [vmem:[%s1348_s5] sm:$0xff] %v383_v26  ;;  %v460_v27 = vmul.f32 %v383_v26, %v1197_v37 }
 0x185   :  { %v478_v36 = vmax.f32 %v462_v30, 0.0 }
 0x186   :  { %v398_v28 = vpop.permute.xlu1 %397  ;;  %v476_v29 = vmax.f32 %v460_v27, 0.0 }
 0x187   :  { %743 = vst [vmem:[%s1348_s5 + $0x18] sm:$0xff] %v398_v28  ;;  %v388_v31 = vpop.permute.xlu0 %387  ;;  %v463_v33 = vmul.f32 %v1200_v39, %v398_v28 }
 0x188   :  { %v461_v32 = vmul.f32 %v388_v31, %v1203_v41  ;;  %741 = vst [vmem:[%s1348_s5 + $0x8] sm:$0xff] %v388_v31  ;;  %972 = vmatprep.mubr.f32.mxu1 %v476_v29 }
 0x189   :  { %v479_v40 = vmax.f32 %v463_v33, 0.0 }
 0x18a   :  { %v477_v34 = vmax.f32 %v461_v32, 0.0 }
 0x18b   :  { %v403_v37 = vpop.permute.xlu0 %402 }
 0x18c   :  { %v464_v38 = vmul.f32 %v403_v37, %v1208_v44  ;;  %744 = vst [vmem:[%s1348_s5 + $0x20] sm:$0xff] %v403_v37  ;;  %973 = vmatmul.mubr.f32.vlgmr.msra.gmra.mrb[0].mxu1 %v477_v34 }
 0x18d   :  { %975 = vmatprep.mubr.f32.mxu1 %v478_v36  ;;  %v408_v35 = vpop.permute.xlu1 %407 }
 0x18e   :  { %v480_v41 = vmax.f32 %v464_v38, 0.0  ;;  %v465_v42 = vmul.f32 %v408_v35, %v1213_v47  ;;  %745 = vst [vmem:[%s1348_s5 + $0x28] sm:$0xff] %v408_v35 }
 0x18f   :  { %v413_v39 = vpop.permute.xlu0 %412 }
 0x190   :  { %v466_v45 = vmul.f32 %v1206_v43, %v413_v39  ;;  %746 = vst [vmem:[%s1348_s5 + $0x30] sm:$0xff] %v413_v39  ;;  %976 = vmatmul.mubr.f32.gmra.mrb[2].mxu1 %v479_v40  ;;  %v481_v48 = vmax.f32 %v465_v42, 0.0 }
 0x191   :  { %978 = vmatprep.mubr.f32.mxu1 %v480_v41  ;;  %v418_v44 = vpop.permute.xlu1 %417 }
 0x192   :  { %v482_v49 = vmax.f32 %v466_v45, 0.0  ;;  %v467_v50 = vmul.f32 %v1211_v46, %v418_v44  ;;  %747 = vst [vmem:[%s1348_s5 + $0x38] sm:$0xff] %v418_v44 }
 0x193   :  { %v423_v47 = vpop.permute.xlu0 %422 }
 0x194   :  { %v468_v51 = vmul.f32 %v423_v47, %v1232_v60  ;;  %748 = vst [vmem:[%s1348_s5 + $0x40] sm:$0xff] %v423_v47  ;;  %979 = vmatmul.mubr.f32.gmra.mrb[4].mxu1 %v481_v48  ;;  %v483_v52 = vmax.f32 %v467_v50, 0.0 }
 0x195   :  { %981 = vmatprep.mubr.f32.mxu1 %v482_v49  ;;  %v428_v43 = vpop.permute.xlu1 %427 }
 0x196   :  { %v484_v53 = vmax.f32 %v468_v51, 0.0  ;;  %v469_v54 = vmul.f32 %v428_v43, %v1237_v1  ;;  %749 = vst [vmem:[%s1348_s5 + $0x48] sm:$0xff] %v428_v43 }
 0x197   :  { %v433_v46 = vpop.permute.xlu0 %432 }
 0x198   :  { %v470_v55 = vmul.f32 %v1224_v56, %v433_v46  ;;  %750 = vst [vmem:[%s1348_s5 + $0x50] sm:$0xff] %v433_v46  ;;  %982 = vmatmul.mubr.f32.gmra.mrb[6].mxu1 %v483_v52  ;;  %v485_v58 = vmax.f32 %v469_v54, 0.0 }
 0x199   :  { %984 = vmatprep.mubr.f32.mxu1 %v484_v53  ;;  %v438_v57 = vpop.permute.xlu1 %437 }
 0x19a   :  { %v486_v59 = vmax.f32 %v470_v55, 0.0  ;;  %v471_v60 = vmul.f32 %v1235_v0, %v438_v57  ;;  %751 = vst [vmem:[%s1348_s5 + $0x58] sm:$0xff] %v438_v57 }
 0x19b   :  { %v443_v61 = vpop.permute.xlu0 %442 }
 0x19c   :  { %v472_v62 = vmul.f32 %v443_v61, %v1244_v8  ;;  %752 = vst [vmem:[%s1348_s5 + $0x60] sm:$0xff] %v443_v61  ;;  %985 = vmatmul.mubr.f32.gmra.mrb[8].mxu1 %v485_v58  ;;  %v487_v63 = vmax.f32 %v471_v60, 0.0 }
 0x19d   :  { %987 = vmatprep.mubr.f32.mxu1 %v486_v59  ;;  %v448_v56 = vpop.permute.xlu1 %447 }
 0x19e   :  { %v488_v1 = vmax.f32 %v472_v62, 0.0  ;;  %v473_v2 = vmul.f32 %v448_v56, %v1249_v12  ;;  %753 = vst [vmem:[%s1348_s5 + $0x68] sm:$0xff] %v448_v56 }
 0x19f   :  { %v453_v0 = vpop.permute.xlu0 %452 }
 0x1a0   :  { %v474_v3 = vmul.f32 %v1242_v7, %v453_v0  ;;  %754 = vst [vmem:[%s1348_s5 + $0x70] sm:$0xff] %v453_v0  ;;  %988 = vmatmul.mubr.f32.gmra.mrb[10].mxu1 %v487_v63  ;;  %v489_v5 = vmax.f32 %v473_v2, 0.0  ;;  %v780_v7 = vld [vmem:[%s1349_s3] ss:$0 sm:$0xff] }
 0x1a1   :  { %990 = vmatprep.mubr.f32.mxu1 %v488_v1  ;;  %v458_v4 = vpop.permute.xlu1 %457 }
 0x1a2   :  { %v490_v6 = vmax.f32 %v474_v3, 0.0  ;;  %v475_v8 = vmul.f32 %v1247_v11, %v458_v4  ;;  %755 = vst [vmem:[%s1348_s5 + $0x78] sm:$0xff] %v458_v4 }
 0x1a4   :  { %991 = vmatmul.mubr.f32.gmra.mrb[12].mxu1 %v489_v5  ;;  %v491_v9 = vmax.f32 %v475_v8, 0.0 }
 0x1a5   :  { %993 = vmatprep.mubr.f32.mxu1 %v490_v6 }
 0x1a8   :  { %994 = vmatmul.mubr.f32.gmra.mrb[14].mxu1 %v491_v9 }
 0x25f   :  { %v974_v10 = vpop.f32.mrb[0].mxu1 }
 0x260   :  { %v587_v12 = vadd.f32 %v974_v10, %v780_v7  ;;  %v581_v13 = vpop.f32.mrb[1].mxu1 }
 0x261   :  { %v582_v14 = vadd.f32 %v780_v7, %v581_v13 }
 0x263   :  { %v816_v15 = vpack.c.bf16 %v587_v12, %v582_v14  ;;  %v977_v16 = vpop.f32.mrb[2].mxu1 }
 0x264   :  { %v597_v17 = vadd.f32 %v977_v16, %v780_v7  ;;  %v591_v11 = vpop.f32.mrb[3].mxu1 }
 0x265   :  { %817 = vst [vmem:[%s1350_s4] sm:$0xff] %v816_v15   ;;  %v592_v18 = vadd.f32 %v780_v7, %v591_v11 }
 0x267   :  { %v821_v19 = vpack.c.bf16 %v597_v17, %v592_v18  ;;  %v980_v20 = vpop.f32.mrb[4].mxu1 }
 0x268   :  { %v607_v21 = vadd.f32 %v980_v20, %v780_v7  ;;  %v601_v22 = vpop.f32.mrb[5].mxu1 }
 0x269   :  { %853 = vst [vmem:[%s1350_s4 + $0x8] sm:$0xff] %v821_v19   ;;  %v602_v23 = vadd.f32 %v780_v7, %v601_v22 }
 0x26b   :  { %v826_v24 = vpack.c.bf16 %v607_v21, %v602_v23  ;;  %v983_v25 = vpop.f32.mrb[6].mxu1 }
 0x26c   :  { %v617_v26 = vadd.f32 %v983_v25, %v780_v7  ;;  %v611_v27 = vpop.f32.mrb[7].mxu1 }
 0x26d   :  { %854 = vst [vmem:[%s1350_s4 + $0x10] sm:$0xff] %v826_v24   ;;  %v612_v28 = vadd.f32 %v780_v7, %v611_v27 }
 0x26f   :  { %v831_v29 = vpack.c.bf16 %v617_v26, %v612_v28  ;;  %v986_v30 = vpop.f32.mrb[8].mxu1 }
 0x270   :  { %v627_v31 = vadd.f32 %v986_v30, %v780_v7  ;;  %v621_v32 = vpop.f32.mrb[9].mxu1 }
 0x271   :  { %855 = vst [vmem:[%s1350_s4 + $0x18] sm:$0xff] %v831_v29   ;;  %v622_v33 = vadd.f32 %v780_v7, %v621_v32 }
 0x273   :  { %v836_v34 = vpack.c.bf16 %v627_v31, %v622_v33  ;;  %v989_v36 = vpop.f32.mrb[10].mxu1 }
 0x274   :  { %v637_v37 = vadd.f32 %v989_v36, %v780_v7  ;;  %v631_v38 = vpop.f32.mrb[11].mxu1 }
 0x275   :  { %856 = vst [vmem:[%s1350_s4 + $0x20] sm:$0xff] %v836_v34   ;;  %v632_v35 = vadd.f32 %v780_v7, %v631_v38 }
 0x277   :  { %v841_v40 = vpack.c.bf16 %v637_v37, %v632_v35  ;;  %v992_v41 = vpop.f32.mrb[12].mxu1 }
 0x278   :  { %v647_v42 = vadd.f32 %v992_v41, %v780_v7  ;;  %v641_v39 = vpop.f32.mrb[13].mxu1 }
 0x279   :  { %857 = vst [vmem:[%s1350_s4 + $0x28] sm:$0xff] %v841_v40   ;;  %v642_v45 = vadd.f32 %v780_v7, %v641_v39 }
 0x27b   :  { %v846_v44 = vpack.c.bf16 %v647_v42, %v642_v45  ;;  %v995_v48 = vpop.f32.mrb[14].mxu1 }
 0x27c   :  { %v657_v49 = vadd.f32 %v995_v48, %v780_v7  ;;  %v651_v50 = vpop.f32.mrb[15].mxu1 }
 0x27d   :  { %858 = vst [vmem:[%s1350_s4 + $0x30] sm:$0xff] %v846_v44   ;;  %v652_v47 = vadd.f32 %v780_v7, %v651_v50 }
 0x27f   :  { %v851_v51 = vpack.c.bf16 %v657_v49, %v652_v47 }
 0x281   :  { %859 = vst [vmem:[%s1350_s4 + $0x38] sm:$0xff] %v851_v51  }

// kernel: gnn_classifier.5
= control target key start
LH: loop header
LB: loop body
LE: loop exit
PB: predicated region body
PF: predicated region fallthrough
CT: control target
= control target key end

     0   :  { %v1013_v1 = vmov 0   ;;  %s1257_s1 = inlined_call_operand.vmem [shape: bf16[128,128], index: 1, kind: input, shape index: {}]   ;;  %s1258_s0 = inlined_call_operand.vmem [shape: bf16[128,128], index: 0, kind: input, shape index: {}]   ;;  %s1259_s2 = inlined_call_operand.vmem [shape: f32[128,128], index: 2, kind: input, shape index: {}]   ;;  %s1260_s3 = inlined_call_operand.vmem [shape: f32[128,128], index: 3, kind: input, shape index: {}]   ;;  %s1261_s4 = inlined_call_operand.vmem [shape: f32[1,128], index: 4, kind: input, shape index: {}]   ;;  %s1262_s5 = inlined_call_operand.vmem [shape: f32[128,128], index: 5, kind: output, shape index: {}]  }
   0x1   :  { %v933_v0 = vld [vmem:[%s1257_s1] sm:$0xff]   ;;  %931 = vset.pattern.permute.xlu0 %v1013_v1  ;;  %932 = vset.pattern.permute.xlu1 %v1013_v1  ;;  %v934_v2 = vld [vmem:[%s1257_s1 + $0x8] sm:$0xff]   ;;  %v935_v3 = vld [vmem:[%s1257_s1 + $0x10] sm:$0xff]  }
   0x2   :  { %810 = vmatprep.subr.bf16.mxu0 %v933_v0  ;;  %v936_v4 = vld [vmem:[%s1257_s1 + $0x18] sm:$0xff]   ;;  %v941_v5 = vld [vmem:[%s1258_s0] sm:$0xff]   ;;  %v938_v7 = vld [vmem:[%s1257_s1 + $0x28] sm:$0xff]  }
   0x3   :  { %811 = vmatpush3.bf16.msra.mxu0 %v933_v0  ;;  %826 = vmatprep.mubr.bf16.mxu0 %v941_v5  ;;  %v937_v6 = vld [vmem:[%s1257_s1 + $0x20] sm:$0xff]   ;;  %v335_v9 = vld [vmem:[%s1259_s2 + $0x10] sm:$0xff]  ;;  %v334_v10 = vld [vmem:[%s1259_s2 + $0x8] sm:$0xff] }
   0x4   :  { %812 = vmatprep.subr.bf16.mxu0 %v934_v2  ;;  %v333_v8 = vld [vmem:[%s1259_s2] sm:$0xff]  ;;  %361 = vperm.xlu1 %932, %v335_v9   ;;  %v336_v11 = vld [vmem:[%s1259_s2 + $0x18] sm:$0xff]  ;;  %v939_v12 = vld [vmem:[%s1257_s1 + $0x30] sm:$0xff]  }
   0x5   :  { %351 = vperm.xlu0 %931, %v333_v8   ;;  %v337_v13 = vld [vmem:[%s1259_s2 + $0x20] sm:$0xff]  ;;  %v446_v15 = vld [vmem:[%s1260_s3 + $0x8] sm:$0xff]  ;;  %v447_v18 = vld [vmem:[%s1260_s3 + $0x10] sm:$0xff] }
   0x6   :  { %v445_v14 = vld [vmem:[%s1260_s3] sm:$0xff]  ;;  %v338_v16 = vld [vmem:[%s1259_s2 + $0x28] sm:$0xff]  ;;  %v448_v19 = vld [vmem:[%s1260_s3 + $0x18] sm:$0xff] }
   0x7   :  { %813 = vmatpush3.bf16.msra.mxu0 %v934_v2  ;;  %v898_v17 = vpack.c.bf16 %v446_v15, %v445_v14  ;;  %v902_v20 = vpack.c.bf16 %v448_v19, %v447_v18  ;;  %v940_v21 = vld [vmem:[%s1257_s1 + $0x38] sm:$0xff]   ;;  %v449_v22 = vld [vmem:[%s1260_s3 + $0x20] sm:$0xff]  ;;  %v450_v23 = vld [vmem:[%s1260_s3 + $0x28] sm:$0xff] }
   0x8   :  { %814 = vmatprep.subr.bf16.mxu0 %v935_v3  ;;  %366 = vperm.xlu1 %932, %v336_v11   ;;  %v339_v24 = vld [vmem:[%s1259_s2 + $0x30] sm:$0xff]  ;;  %v340_v25 = vld [vmem:[%s1259_s2 + $0x38] sm:$0xff]  ;;  %v906_v26 = vpack.c.bf16 %v450_v23, %v449_v22  ;;  %v942_v29 = vld [vmem:[%s1258_s0 + $0x8] sm:$0xff]  }
   0x9   :  { %356 = vperm.xlu0 %931, %v334_v10   ;;  %899 = vmatprep.subr.bf16.mxu1 %v898_v17  ;;  %v451_v27 = vld [vmem:[%s1260_s3 + $0x30] sm:$0xff]  ;;  %v452_v28 = vld [vmem:[%s1260_s3 + $0x38] sm:$0xff]  ;;  %v341_v30 = vld [vmem:[%s1259_s2 + $0x40] sm:$0xff] }
   0xa   :  { %901 = vmatpush3.bf16.msra.mxu1 %v898_v17  ;;  %v342_v31 = vld [vmem:[%s1259_s2 + $0x48] sm:$0xff]  ;;  %v943_v32 = vld [vmem:[%s1258_s0 + $0x10] sm:$0xff]   ;;  %v910_v33 = vpack.c.bf16 %v452_v28, %v451_v27  ;;  %v453_v34 = vld [vmem:[%s1260_s3 + $0x40] sm:$0xff] }
   0xb   :  { %815 = vmatpush3.bf16.msra.mxu0 %v935_v3  ;;  %903 = vmatprep.subr.bf16.mxu1 %v902_v20  ;;  %v454_v35 = vld [vmem:[%s1260_s3 + $0x48] sm:$0xff]  ;;  %v343_v36 = vld [vmem:[%s1259_s2 + $0x50] sm:$0xff]  ;;  %v344_v37 = vld [vmem:[%s1259_s2 + $0x58] sm:$0xff] }
   0xc   :  { %816 = vmatprep.subr.bf16.mxu0 %v936_v4  ;;  %376 = vperm.xlu1 %932, %v338_v16   ;;  %v914_v38 = vpack.c.bf16 %v454_v35, %v453_v34  ;;  %v455_v39 = vld [vmem:[%s1260_s3 + $0x50] sm:$0xff]  ;;  %v456_v40 = vld [vmem:[%s1260_s3 + $0x58] sm:$0xff]  ;;  %v345_v42 = vld [vmem:[%s1259_s2 + $0x60] sm:$0xff] }
   0xd   :  { %371 = vperm.xlu0 %931, %v337_v13   ;;  %v944_v41 = vld [vmem:[%s1258_s0 + $0x18] sm:$0xff]   ;;  %v346_v43 = vld [vmem:[%s1259_s2 + $0x68] sm:$0xff]  ;;  %v945_v44 = vld [vmem:[%s1258_s0 + $0x20] sm:$0xff]   ;;  %v918_v45 = vpack.c.bf16 %v456_v40, %v455_v39 }
   0xe   :  { %905 = vmatpush3.bf16.msra.mxu1 %v902_v20  ;;  %v457_v46 = vld [vmem:[%s1260_s3 + $0x60] sm:$0xff]  ;;  %v458_v47 = vld [vmem:[%s1260_s3 + $0x68] sm:$0xff]  ;;  %v347_v48 = vld [vmem:[%s1259_s2 + $0x70] sm:$0xff] }
   0xf   :  { %817 = vmatpush3.bf16.msra.mxu0 %v936_v4  ;;  %907 = vmatprep.subr.bf16.mxu1 %v906_v26  ;;  %v348_v49 = vld [vmem:[%s1259_s2 + $0x78] sm:$0xff]  ;;  %v922_v50 = vpack.c.bf16 %v458_v47, %v457_v46  ;;  %v946_v51 = vld [vmem:[%s1258_s0 + $0x28] sm:$0xff]   ;;  %v947_v52 = vld [vmem:[%s1258_s0 + $0x30] sm:$0xff]  }
  0x10   :  { %818 = vmatprep.subr.bf16.mxu0 %v937_v6  ;;  %386 = vperm.xlu1 %932, %v340_v25   ;;  %v948_v53 = vld [vmem:[%s1258_s0 + $0x38] sm:$0xff]   ;;  %v459_v54 = vld [vmem:[%s1260_s3 + $0x70] sm:$0xff] }
  0x11   :  { %381 = vperm.xlu0 %931, %v339_v24   ;;  %v460_v55 = vld [vmem:[%s1260_s3 + $0x78] sm:$0xff] }
  0x12   :  { %909 = vmatpush3.bf16.msra.mxu1 %v906_v26  ;;  %v926_v56 = vpack.c.bf16 %v460_v55, %v459_v54 }
  0x13   :  { %819 = vmatpush3.bf16.msra.mxu0 %v937_v6  ;;  %911 = vmatprep.subr.bf16.mxu1 %v910_v33 }
  0x14   :  { %820 = vmatprep.subr.bf16.mxu0 %v938_v7  ;;  %396 = vperm.xlu1 %932, %v342_v31  }
  0x15   :  { %391 = vperm.xlu0 %931, %v341_v30  }
  0x16   :  { %913 = vmatpush3.bf16.msra.mxu1 %v910_v33 }
  0x17   :  { %821 = vmatpush3.bf16.msra.mxu0 %v938_v7  ;;  %915 = vmatprep.subr.bf16.mxu1 %v914_v38 }
  0x18   :  { %822 = vmatprep.subr.bf16.mxu0 %v939_v12  ;;  %406 = vperm.xlu1 %932, %v344_v37  }
  0x19   :  { %401 = vperm.xlu0 %931, %v343_v36  }
  0x1a   :  { %917 = vmatpush3.bf16.msra.mxu1 %v914_v38 }
  0x1b   :  { %823 = vmatpush3.bf16.msra.mxu0 %v939_v12  ;;  %919 = vmatprep.subr.bf16.mxu1 %v918_v45 }
  0x1c   :  { %824 = vmatprep.subr.bf16.mxu0 %v940_v21  ;;  %416 = vperm.xlu1 %932, %v346_v43  }
  0x1d   :  { %411 = vperm.xlu0 %931, %v345_v42  }
  0x1e   :  { %921 = vmatpush3.bf16.msra.mxu1 %v918_v45 }
  0x1f   :  { %825 = vmatpush3.bf16.msra.mxu0 %v940_v21  ;;  %923 = vmatprep.subr.bf16.mxu1 %v922_v50 }
  0x20   :  { %426 = vperm.xlu1 %932, %v348_v49  }
  0x21   :  { %421 = vperm.xlu0 %931, %v347_v48  }
  0x22   :  { %827 = vmatmul.mubr.bf16.vlgmr.msra.gmra.mrb[0].mxu0 %v942_v29  ;;  %925 = vmatpush3.bf16.msra.mxu1 %v922_v50 }
  0x23   :  { %830 = vmatprep.mubr.bf16.mxu0 %v943_v32  ;;  %927 = vmatprep.subr.bf16.mxu1 %v926_v56 }
  0x26   :  { %929 = vmatpush3.bf16.msra.mxu1 %v926_v56 }
  0x2a   :  { %831 = vmatmul.mubr.bf16.gmra.mrb[4].mxu0 %v944_v41  ;;  %v1191_v41 = vld [vmem:[%s1261_s4] ss:$0 sm:$0xff] }
  0x2b   :  { %834 = vmatprep.mubr.bf16.mxu0 %v945_v44 }
  0x32   :  { %835 = vmatmul.mubr.bf16.gmra.mrb[8].mxu0 %v946_v51 }
  0x33   :  { %838 = vmatprep.mubr.bf16.mxu0 %v947_v52 }
  0x3a   :  { %839 = vmatmul.mubr.bf16.gmra.mrb[12].mxu0 %v948_v53 }
  0x83   :  { %v362_v58 = vpop.permute.xlu1 %361 }
  0x84   :  { %v352_v57 = vpop.permute.xlu0 %351 }
  0x87   :  { %v367_v60 = vpop.permute.xlu1 %366 }
  0x88   :  { %v357_v59 = vpop.permute.xlu0 %356 }
  0x8b   :  { %v377_v63 = vpop.permute.xlu1 %376 }
  0x8c   :  { %v372_v61 = vpop.permute.xlu0 %371 }
  0x8f   :  { %v387_v7 = vpop.permute.xlu1 %386 }
  0x90   :  { %v382_v4 = vpop.permute.xlu0 %381 }
  0x93   :  { %v397_v16 = vpop.permute.xlu1 %396 }
  0x94   :  { %v392_v11 = vpop.permute.xlu0 %391 }
  0x97   :  { %v407_v24 = vpop.permute.xlu1 %406 }
  0x98   :  { %v402_v18 = vpop.permute.xlu0 %401 }
  0x9b   :  { %v417_v31 = vpop.permute.xlu1 %416 }
  0x9c   :  { %v412_v28 = vpop.permute.xlu0 %411 }
  0x9f   :  { %v427_v39 = vpop.permute.xlu1 %426 }
  0xa0   :  { %v422_v36 = vpop.permute.xlu0 %421 }
  0xf5   :  { %v828_v62 = vpop.f32.mrb[0].mxu0 }
  0xf6   :  { %v219_v0 = vpop.f32.mrb[1].mxu0  ;;  %v431_v6 = vmul.f32 %v828_v62, %v362_v58 }
  0xf7   :  { %v829_v1 = vpop.f32.mrb[2].mxu0  ;;  %v429_v2 = vmul.f32 %v352_v57, %v219_v0 }
  0xf8   :  { %v222_v3 = vpop.f32.mrb[3].mxu0  ;;  %v432_v8 = vmul.f32 %v829_v1, %v367_v60 }
  0xf9   :  { %v430_v5 = vmul.f32 %v357_v59, %v222_v3  ;;  %874 = vmatprep.mubr.f32.mxu1 %v429_v2 }
  0xfb   :  { %875 = vmatmul.mubr.f32.vlgmr.msra.gmra.mrb[0].mxu1 %v430_v5 }
  0xfc   :  { %877 = vmatprep.mubr.f32.mxu1 %v431_v6 }
  0xfd   :  { %v832_v9 = vpop.f32.mrb[4].mxu0 }
  0xfe   :  { %v235_v10 = vpop.f32.mrb[5].mxu0  ;;  %v435_v17 = vmul.f32 %v832_v9, %v382_v4 }
  0xff   :  { %v433_v12 = vmul.f32 %v372_v61, %v235_v10  ;;  %v833_v13 = vpop.f32.mrb[6].mxu0  ;;  %878 = vmatmul.mubr.f32.gmra.mrb[2].mxu1 %v432_v8 }
 0x100   :  { %v238_v14 = vpop.f32.mrb[7].mxu0  ;;  %v436_v19 = vmul.f32 %v833_v13, %v387_v7 }
 0x101   :  { %v434_v15 = vmul.f32 %v377_v63, %v238_v14  ;;  %880 = vmatprep.mubr.f32.mxu1 %v433_v12 }
 0x103   :  { %881 = vmatmul.mubr.f32.gmra.mrb[4].mxu1 %v434_v15 }
 0x104   :  { %883 = vmatprep.mubr.f32.mxu1 %v435_v17 }
 0x105   :  { %v836_v20 = vpop.f32.mrb[8].mxu0 }
 0x106   :  { %v251_v21 = vpop.f32.mrb[9].mxu0  ;;  %v439_v27 = vmul.f32 %v836_v20, %v402_v18 }
 0x107   :  { %v437_v22 = vmul.f32 %v392_v11, %v251_v21  ;;  %v837_v23 = vpop.f32.mrb[10].mxu0  ;;  %884 = vmatmul.mubr.f32.gmra.mrb[6].mxu1 %v436_v19 }
 0x108   :  { %v254_v25 = vpop.f32.mrb[11].mxu0  ;;  %v440_v29 = vmul.f32 %v837_v23, %v407_v24 }
 0x109   :  { %v438_v26 = vmul.f32 %v397_v16, %v254_v25  ;;  %886 = vmatprep.mubr.f32.mxu1 %v437_v22 }
 0x10b   :  { %887 = vmatmul.mubr.f32.gmra.mrb[8].mxu1 %v438_v26 }
 0x10c   :  { %889 = vmatprep.mubr.f32.mxu1 %v439_v27 }
 0x10d   :  { %v840_v30 = vpop.f32.mrb[12].mxu0 }
 0x10e   :  { %v267_v32 = vpop.f32.mrb[13].mxu0  ;;  %v443_v38 = vmul.f32 %v840_v30, %v422_v36 }
 0x10f   :  { %v441_v33 = vmul.f32 %v412_v28, %v267_v32  ;;  %v841_v34 = vpop.f32.mrb[14].mxu0  ;;  %890 = vmatmul.mubr.f32.gmra.mrb[10].mxu1 %v440_v29 }
 0x110   :  { %v270_v35 = vpop.f32.mrb[15].mxu0  ;;  %v444_v40 = vmul.f32 %v841_v34, %v427_v39 }
 0x111   :  { %v442_v37 = vmul.f32 %v417_v31, %v270_v35  ;;  %892 = vmatprep.mubr.f32.mxu1 %v441_v33 }
 0x113   :  { %893 = vmatmul.mubr.f32.gmra.mrb[12].mxu1 %v442_v37 }
 0x114   :  { %895 = vmatprep.mubr.f32.mxu1 %v443_v38 }
 0x117   :  { %896 = vmatmul.mubr.f32.gmra.mrb[14].mxu1 %v444_v40 }
 0x1ce   :  { %v876_v42 = vpop.f32.mrb[0].mxu1 }
 0x1cf   :  { %v540_v43 = vadd.f32 %v876_v42, %v1191_v41  ;;  %v534_v44 = vpop.f32.mrb[1].mxu1 }
 0x1d0   :  { %v535_v45 = vadd.f32 %v1191_v41, %v534_v44 }
 0x1d1   :  { %v747_v46 = vmul.f32 -1.442695, %v540_v43 }
 0x1d2   :  { %v746_v47 = vmul.f32 -1.442695, %v535_v45  ;;  %v879_v48 = vpop.f32.mrb[2].mxu1 }
 0x1d3   :  { %949 = vpow2.f32 %v747_v46  ;;  %v550_v49 = vadd.f32 %v879_v48, %v1191_v41  ;;  %v544_v50 = vpop.f32.mrb[3].mxu1 }
 0x1d4   :  { %951 = vpow2.f32 %v746_v47  ;;  %v545_v51 = vadd.f32 %v1191_v41, %v544_v50 }
 0x1d5   :  { %v749_v52 = vmul.f32 -1.442695, %v550_v49 }
 0x1d6   :  { %v748_v53 = vmul.f32 -1.442695, %v545_v51  ;;  %v882_v54 = vpop.f32.mrb[4].mxu1 }
 0x1d7   :  { %953 = vpow2.f32 %v749_v52  ;;  %v560_v55 = vadd.f32 %v882_v54, %v1191_v41  ;;  %v554_v56 = vpop.f32.mrb[5].mxu1 }
 0x1d8   :  { %955 = vpow2.f32 %v748_v53  ;;  %v555_v57 = vadd.f32 %v1191_v41, %v554_v56 }
 0x1d9   :  { %v751_v58 = vmul.f32 -1.442695, %v560_v55 }
 0x1da   :  { %v750_v59 = vmul.f32 -1.442695, %v555_v57  ;;  %v885_v60 = vpop.f32.mrb[6].mxu1 }
 0x1db   :  { %957 = vpow2.f32 %v751_v58  ;;  %v570_v61 = vadd.f32 %v885_v60, %v1191_v41  ;;  %v564_v62 = vpop.f32.mrb[7].mxu1 }
 0x1dc   :  { %959 = vpow2.f32 %v750_v59  ;;  %v565_v63 = vadd.f32 %v1191_v41, %v564_v62 }
 0x1dd   :  { %v950_v0 = vpop.eup %949  ;;  %v753_v1 = vmul.f32 -1.442695, %v570_v61 }
 0x1de   :  { %v952_v2 = vpop.eup %951  ;;  %v662_v3 = vadd.f32 1.0, %v950_v0  ;;  %v752_v4 = vmul.f32 -1.442695, %v565_v63  ;;  %v888_v5 = vpop.f32.mrb[8].mxu1 }
 0x1df   :  { %v661_v6 = vadd.f32 1.0, %v952_v2  ;;  %961 = vpow2.f32 %v753_v1  ;;  %v580_v7 = vadd.f32 %v888_v5, %v1191_v41  ;;  %v574_v8 = vpop.f32.mrb[9].mxu1 }
 0x1e0   :  { %963 = vrcp.f32 %v662_v3  ;;  %v575_v9 = vadd.f32 %v1191_v41, %v574_v8 }
 0x1e1   :  { %v954_v10 = vpop.eup %953  ;;  %965 = vrcp.f32 %v661_v6  ;;  %v755_v11 = vmul.f32 -1.442695, %v580_v7 }
 0x1e2   :  { %v956_v12 = vpop.eup %955  ;;  %v664_v13 = vadd.f32 1.0, %v954_v10  ;;  %967 = vpow2.f32 %v752_v4  ;;  %v754_v14 = vmul.f32 -1.442695, %v575_v9  ;;  %v891_v15 = vpop.f32.mrb[10].mxu1 }
 0x1e3   :  { %v663_v16 = vadd.f32 1.0, %v956_v12  ;;  %969 = vpow2.f32 %v755_v11  ;;  %v590_v17 = vadd.f32 %v891_v15, %v1191_v41  ;;  %v584_v18 = vpop.f32.mrb[11].mxu1 }
 0x1e4   :  { %971 = vrcp.f32 %v664_v13  ;;  %v585_v19 = vadd.f32 %v1191_v41, %v584_v18 }
 0x1e5   :  { %v958_v20 = vpop.eup %957  ;;  %973 = vrcp.f32 %v663_v16  ;;  %v757_v21 = vmul.f32 -1.442695, %v590_v17 }
 0x1e6   :  { %v960_v22 = vpop.eup %959  ;;  %v666_v23 = vadd.f32 1.0, %v958_v20  ;;  %975 = vpow2.f32 %v754_v14  ;;  %v756_v24 = vmul.f32 -1.442695, %v585_v19  ;;  %v894_v25 = vpop.f32.mrb[12].mxu1 }
 0x1e7   :  { %v665_v26 = vadd.f32 1.0, %v960_v22  ;;  %977 = vpow2.f32 %v757_v21  ;;  %v600_v27 = vadd.f32 %v894_v25, %v1191_v41  ;;  %v594_v28 = vpop.f32.mrb[13].mxu1 }
 0x1e8   :  { %979 = vrcp.f32 %v666_v23  ;;  %v595_v29 = vadd.f32 %v1191_v41, %v594_v28 }
 0x1e9   :  { %v962_v30 = vpop.eup %961  ;;  %981 = vrcp.f32 %v665_v26  ;;  %v759_v31 = vmul.f32 -1.442695, %v600_v27 }
 0x1ea   :  { %v964_v32 = vpop.eup %963  ;;  %v668_v33 = vadd.f32 1.0, %v962_v30  ;;  %983 = vpow2.f32 %v756_v24  ;;  %v758_v34 = vmul.f32 -1.442695, %v595_v29  ;;  %v897_v35 = vpop.f32.mrb[14].mxu1 }
 0x1eb   :  { %v966_v36 = vpop.eup %965  ;;  %710 = vst [vmem:[%s1262_s5 + $0x8] sm:$0xff] %v964_v32  ;;  %985 = vpow2.f32 %v759_v31  ;;  %v610_v37 = vadd.f32 %v897_v35, %v1191_v41  ;;  %v604_v38 = vpop.f32.mrb[15].mxu1 }
 0x1ec   :  { %v968_v39 = vpop.eup %967  ;;  %709 = vst [vmem:[%s1262_s5] sm:$0xff] %v966_v36  ;;  %987 = vrcp.f32 %v668_v33  ;;  %v605_v40 = vadd.f32 %v1191_v41, %v604_v38 }
 0x1ed   :  { %v970_v42 = vpop.eup %969  ;;  %v667_v43 = vadd.f32 1.0, %v968_v39  ;;  %989 = vpow2.f32 %v758_v34  ;;  %v761_v44 = vmul.f32 -1.442695, %v610_v37 }
 0x1ee   :  { %v972_v45 = vpop.eup %971  ;;  %v670_v46 = vadd.f32 1.0, %v970_v42  ;;  %v760_v47 = vmul.f32 -1.442695, %v605_v40 }
 0x1ef   :  { %v974_v48 = vpop.eup %973  ;;  %712 = vst [vmem:[%s1262_s5 + $0x18] sm:$0xff] %v972_v45  ;;  %991 = vrcp.f32 %v667_v43 }
 0x1f0   :  { %v976_v49 = vpop.eup %975  ;;  %711 = vst [vmem:[%s1262_s5 + $0x10] sm:$0xff] %v974_v48  ;;  %993 = vrcp.f32 %v670_v46 }
 0x1f1   :  { %v978_v41 = vpop.eup %977  ;;  %v669_v50 = vadd.f32 1.0, %v976_v49  ;;  %995 = vpow2.f32 %v761_v44 }
 0x1f2   :  { %v980_v51 = vpop.eup %979  ;;  %v672_v52 = vadd.f32 1.0, %v978_v41  ;;  %997 = vpow2.f32 %v760_v47 }
 0x1f3   :  { %v982_v53 = vpop.eup %981  ;;  %714 = vst [vmem:[%s1262_s5 + $0x28] sm:$0xff] %v980_v51  ;;  %999 = vrcp.f32 %v669_v50 }
 0x1f4   :  { %v984_v54 = vpop.eup %983  ;;  %713 = vst [vmem:[%s1262_s5 + $0x20] sm:$0xff] %v982_v53  ;;  %1001 = vrcp.f32 %v672_v52 }
 0x1f5   :  { %v986_v55 = vpop.eup %985  ;;  %v671_v56 = vadd.f32 1.0, %v984_v54 }
 0x1f6   :  { %v988_v57 = vpop.eup %987  ;;  %v674_v58 = vadd.f32 1.0, %v986_v55 }
 0x1f7   :  { %v990_v59 = vpop.eup %989  ;;  %716 = vst [vmem:[%s1262_s5 + $0x38] sm:$0xff] %v988_v57  ;;  %1003 = vrcp.f32 %v671_v56 }
 0x1f8   :  { %1005 = vrcp.f32 %v674_v58  ;;  %v673_v60 = vadd.f32 1.0, %v990_v59 }
 0x1f9   :  { %v992_v61 = vpop.eup %991 }
 0x1fa   :  { %v994_v62 = vpop.eup %993  ;;  %715 = vst [vmem:[%s1262_s5 + $0x30] sm:$0xff] %v992_v61  ;;  %1007 = vrcp.f32 %v673_v60 }
 0x1fb   :  { %v996_v63 = vpop.eup %995  ;;  %718 = vst [vmem:[%s1262_s5 + $0x48] sm:$0xff] %v994_v62 }
 0x1fc   :  { %v998_v0 = vpop.eup %997  ;;  %v676_v1 = vadd.f32 1.0, %v996_v63 }
 0x1fd   :  { %v1000_v2 = vpop.eup %999  ;;  %v675_v3 = vadd.f32 1.0, %v998_v0 }
 0x1fe   :  { %v1002_v4 = vpop.eup %1001  ;;  %717 = vst [vmem:[%s1262_s5 + $0x40] sm:$0xff] %v1000_v2  ;;  %1009 = vrcp.f32 %v676_v1 }
 0x1ff   :  { %720 = vst [vmem:[%s1262_s5 + $0x58] sm:$0xff] %v1002_v4  ;;  %1011 = vrcp.f32 %v675_v3 }
 0x201   :  { %v1004_v5 = vpop.eup %1003 }
 0x202   :  { %v1006_v6 = vpop.eup %1005  ;;  %719 = vst [vmem:[%s1262_s5 + $0x50] sm:$0xff] %v1004_v5 }
 0x203   :  { %722 = vst [vmem:[%s1262_s5 + $0x68] sm:$0xff] %v1006_v6 }
 0x204   :  { %v1008_v7 = vpop.eup %1007 }
 0x205   :  { %721 = vst [vmem:[%s1262_s5 + $0x60] sm:$0xff] %v1008_v7 }
 0x208   :  { %v1010_v8 = vpop.eup %1009 }
 0x209   :  { %v1012_v9 = vpop.eup %1011  ;;  %724 = vst [vmem:[%s1262_s5 + $0x78] sm:$0xff] %v1010_v8 }
 0x20a   :  { %723 = vst [vmem:[%s1262_s5 + $0x70] sm:$0xff] %v1012_v9 }

</bundles_post_ra>
